<compile_context>
chip_gen: v7x
topology: tpu7x:2x2x1
jax: 0.10.0
libtpu: 0.0.40
codegen_flags: <defaults>
</compile_context>

<pallas_src>
import functools
import math

import jax
import jax.numpy as jnp
from jax import lax
from jax.experimental import pallas as pl
from jax.experimental.pallas import tpu as pltpu

LANE = 128      # vreg lane width
SUB = 8         # vreg sublane count
MAX_BB = 64     # batch block: <=64 so batch>=16 yields >=2 parallel blocks (v7x)
MAX_TCHUNK = 64 # time chunk: keeps VMEM O(Tc), lets DMA pipeline overlap compute
MAX_UNROLL = 8  # bounded unroll of the recurrence loop


def _round_up(v, m):
    return ((v + m - 1) // m) * m


def _vmem_limit_bytes(est_bytes):
    """Generation-aware scoped-VMEM limit: ~2x estimate, capped at 75% of physical."""
    try:
        cap = int(pltpu.get_tpu_info().vmem_capacity_bytes)
    except Exception:
        cap = 64 * 1024 * 1024          # conservative fallback (v7x per-core VMEM)
    return min(int(0.75 * cap), max(32 * 1024 * 1024, 2 * est_bytes))


def _lstm_classifier_kernel(x_ref, wih_ref, whh_ref, b_ref, wout_ref, bout_ref,
                            out_ref, h_ref, c_ref, xg_ref,
                            *, seq_len, padded_seq_len, unroll):
    """One (batch-block, time-chunk) grid cell.

    x_ref    : (Tc, BB, I)    bf16 time-chunk of this batch block (time-major)
    wih_ref  : (I, 4*Hp)      bf16, pre-transposed, per-gate padded
    whh_ref  : (Hp, 4*Hp)     bf16, pre-transposed, per-gate padded
    b_ref    : (1, 4*Hp)      f32, b_ih + b_hh, per-gate padded
    wout_ref : (Hp, Cp)       f32, pre-transposed, class-padded (padded cols = 0)
    bout_ref : (1, Cp)        f32, padded classes = -1e30
    out_ref  : (BB, Cp)       f32 log-probs (written only on the last time chunk)
    h_ref/c_ref : (BB, Hp)    f32 VMEM carry across time chunks
    xg_ref   : (Tc, BB, 4*Hp) bf16 scratch: this chunk's hoisted input projection
    """
    t_blk = pl.program_id(1)
    n_tblk = pl.num_programs(1)
    Tc, BB, I = x_ref.shape
    Hp = whh_ref.shape[0]

    @pl.when(t_blk == 0)
    def _():
        h_ref[...] = jnp.zeros_like(h_ref)
        c_ref[...] = jnp.zeros_like(c_ref)

    # --- Hoisted input projection for this chunk: ONE (Tc*BB, I)@(I, 4Hp) matmul.
    x_all = x_ref[...].reshape(Tc * BB, I)                       # bf16
    xg = jnp.dot(x_all, wih_ref[...], preferred_element_type=jnp.float32)
    xg = xg + b_ref[...]                                         # bias folded in once
    xg_ref[...] = xg.reshape(Tc, BB, 4 * Hp).astype(jnp.bfloat16)

    t0 = t_blk * Tc                                              # global first step

    def step(t, carry):
        h, c = carry                                             # (BB, Hp) f32
        hb = h.astype(jnp.bfloat16)
        xg_t = xg_ref[t]                                         # (BB, 4Hp) bf16

        def gate(g):
            # Per-gate (BB,Hp)@(Hp,Hp) bf16 matmul, f32 accumulation. Gate slices
            # are 128-lane aligned (Hp % 128 == 0); keeping gates per-slice bounds
            # vreg pressure in the serial inner loop.
            return (xg_t[:, g * Hp:(g + 1) * Hp].astype(jnp.float32)
                    + jnp.dot(hb, whh_ref[:, g * Hp:(g + 1) * Hp],
                              preferred_element_type=jnp.float32))

        f_g = jax.nn.sigmoid(gate(1))
        c_new = f_g * c
        i_g = jax.nn.sigmoid(gate(0))
        g_g = jnp.tanh(gate(2))
        c_new = c_new + i_g * g_g
        o_g = jax.nn.sigmoid(gate(3))
        h_new = o_g * jnp.tanh(c_new)

        if padded_seq_len != seq_len:
            # Steps past the true sequence length (time padding) are no-ops.
            valid = (t0 + t) < seq_len
            h_new = jnp.where(valid, h_new, h)
            c_new = jnp.where(valid, c_new, c)
        return h_new, c_new

    h_f, c_f = lax.fori_loop(0, Tc, step, (h_ref[...], c_ref[...]), unroll=unroll)
    h_ref[...] = h_f
    c_ref[...] = c_f

    @pl.when(t_blk == n_tblk - 1)
    def _():
        # Dropout(p=0.2) in eval/inference mode -> identity.
        logits = (jnp.dot(h_f, wout_ref[...], preferred_element_type=jnp.float32)
                  + bout_ref[...])                               # (BB, Cp), padded
        m = jnp.max(logits, axis=-1, keepdims=True)
        shifted = logits - m
        out_ref[...] = shifted - jnp.log(
            jnp.sum(jnp.exp(shifted), axis=-1, keepdims=True))


def pack_params(w_ih, w_hh, b_ih, b_hh, w_out, b_out):
    """One-time weight repacking (do this ONCE, outside the steady-state path).

    PyTorch layouts: w_ih (4H, I), w_hh (4H, H), b_* (4H,), w_out (C, H), b_out (C,).
    """
    H = w_hh.shape[1]
    I = w_ih.shape[1]
    C = w_out.shape[0]
    Hp = _round_up(H, LANE)
    Cp = _round_up(C, LANE)

    # W_ih (4H, I) -> (I, 4, H) -> per-gate pad -> (I, 4*Hp), bf16 MXU operand.
    w_ih_t = jnp.transpose(w_ih.reshape(4, H, I).astype(jnp.float32), (2, 0, 1))
    w_ih_p = jnp.pad(w_ih_t, ((0, 0), (0, 0), (0, Hp - H)))
    w_ih_p = w_ih_p.reshape(I, 4 * Hp).astype(jnp.bfloat16)

    # W_hh (4H, H) -> (H_in, 4, H_out) -> pad both hidden axes -> (Hp, 4*Hp), bf16.
    w_hh_t = jnp.transpose(w_hh.reshape(4, H, H).astype(jnp.float32), (2, 0, 1))
    w_hh_p = jnp.pad(w_hh_t, ((0, Hp - H), (0, 0), (0, Hp - H)))
    w_hh_p = w_hh_p.reshape(Hp, 4 * Hp).astype(jnp.bfloat16)

    # Combined bias, per-gate zero-padded (keeps padded hidden/cell units at 0).
    bias = (b_ih + b_hh).astype(jnp.float32).reshape(4, H)
    bias_p = jnp.pad(bias, ((0, 0), (0, Hp - H))).reshape(1, 4 * Hp)

    # hidden2out: (C, H) -> (Hp, Cp); padded hidden rows = 0, padded class columns
    # get bias -1e30 so the lane-dense log-softmax ignores them.
    w_out_p = jnp.pad(jnp.transpose(w_out, (1, 0)).astype(jnp.float32),
                      ((0, Hp - H), (0, Cp - C)))
    b_out_p = jnp.pad(b_out.astype(jnp.float32).reshape(1, C),
                      ((0, 0), (0, Cp - C)), constant_values=-1e30)

    return dict(w_ih=w_ih_p, w_hh=w_hh_p, bias=bias_p,
                w_out=w_out_p, b_out=b_out_p, output_size=C)


@functools.partial(jax.jit, static_argnames=("output_size",))
def _forward_impl(x_bsi, w_ih_p, w_hh_p, bias_p, w_out_p, b_out_p, *, output_size):
    B, S, I = x_bsi.shape
    Hp = w_hh_p.shape[0]
    Cp = w_out_p.shape[1]
    C = output_size

    # ---- Blocking ------------------------------------------------------------
    BB = min(MAX_BB, _round_up(B, SUB))         # batch block (sublane aligned)
    Bp = _round_up(B, BB)
    n_bblocks = Bp // BB
    Tc = min(MAX_TCHUNK, S)                     # time chunk
    Sp = _round_up(S, Tc)
    n_tblocks = Sp // Tc
    unroll = max(1, min(MAX_UNROLL, Tc))

    # ---- x layout: batch_first -> contiguous per-block, time-major slabs ------
    # (B,S,I) -> (S,B,I) -> pad -> (Sp, n_blocks, BB, I) -> (n_blocks, Sp, BB, I)
    x_sbi = jnp.transpose(x_bsi, (1, 0, 2)).astype(jnp.float32)
    x_pad = jnp.pad(x_sbi, ((0, Sp - S), (0, Bp - B), (0, 0)))
    x_blk = jnp.transpose(x_pad.reshape(Sp, n_bblocks, BB, I), (1, 0, 2, 3))
    x_blk = x_blk.astype(jnp.bfloat16)

    # ---- VMEM budget (double-buffered pipelined operands + scratch) -----------
    def _nbytes(shape, dtype):
        return math.prod(shape) * jnp.dtype(dtype).itemsize

    est = (
        2 * _nbytes((Tc, BB, I), jnp.bfloat16)          # x chunk (double-buffered)
        + 2 * _nbytes((I, 4 * Hp), jnp.bfloat16)        # W_ih^T
        + 2 * _nbytes((Hp, 4 * Hp), jnp.bfloat16)       # W_hh^T
        + 2 * _nbytes((1, 4 * Hp), jnp.float32)         # bias
        + 2 * _nbytes((Hp, Cp), jnp.float32)            # W_out^T
        + 2 * _nbytes((1, Cp), jnp.float32)             # b_out
        + 2 * _nbytes((BB, Cp), jnp.float32)            # out block
        + 2 * _nbytes((BB, Hp), jnp.float32)            # h, c carries
        + _nbytes((Tc, BB, 4 * Hp), jnp.bfloat16)       # xg scratch
    )
    vmem_limit = _vmem_limit_bytes(est)

    kernel = functools.partial(_lstm_classifier_kernel,
                               seq_len=S, padded_seq_len=Sp, unroll=unroll)

    out_padded = pl.pallas_call(
        kernel,
        out_shape=jax.ShapeDtypeStruct((Bp, Cp), jnp.float32),
        grid=(n_bblocks, n_tblocks),
        in_specs=[
            pl.BlockSpec((None, Tc, BB, I), lambda b, t: (b, t, 0, 0)),  # x chunk
            pl.BlockSpec((I, 4 * Hp), lambda b, t: (0, 0)),              # W_ih^T
            pl.BlockSpec((Hp, 4 * Hp), lambda b, t: (0, 0)),             # W_hh^T
            pl.BlockSpec((1, 4 * Hp), lambda b, t: (0, 0)),              # bias
            pl.BlockSpec((Hp, Cp), lambda b, t: (0, 0)),                 # W_out^T
            pl.BlockSpec((1, Cp), lambda b, t: (0, 0)),                  # b_out
        ],
        out_specs=pl.BlockSpec((BB, Cp), lambda b, t: (b, 0)),
        scratch_shapes=[
            pltpu.VMEM((BB, Hp), jnp.float32),              # h carry
            pltpu.VMEM((BB, Hp), jnp.float32),              # c carry
            pltpu.VMEM((Tc, BB, 4 * Hp), jnp.bfloat16),     # xg chunk projection
        ],
        compiler_params=pltpu.CompilerParams(
            dimension_semantics=("parallel", "arbitrary"),
            vmem_limit_bytes=vmem_limit,
        ),
    )(x_blk, w_ih_p, w_hh_p, bias_p, w_out_p, b_out_p)

    return out_padded[:B, :C]


def lstm_classifier_forward(x_bsi, packed_params):
    """x_bsi: (batch, seq, input_dim), packed_params from pack_params()."""
    return _forward_impl(x_bsi,
                         packed_params["w_ih"], packed_params["w_hh"],
                         packed_params["bias"], packed_params["w_out"],
                         packed_params["b_out"],
                         output_size=packed_params["output_size"])


def _reference_forward(x_bsi, w_ih, w_hh, b_ih, b_hh, w_out, b_out):
    """Pure-JAX f32 reference matching the PyTorch module (eval mode)."""
    B, S, I = x_bsi.shape
    H = w_hh.shape[1]
    h = jnp.zeros((B, H), jnp.float32)
    c = jnp.zeros((B, H), jnp.float32)
    for t in range(S):
        gates = x_bsi[:, t, :] @ w_ih.T + h @ w_hh.T + b_ih + b_hh
        i_g = jax.nn.sigmoid(gates[:, 0 * H:1 * H])
        f_g = jax.nn.sigmoid(gates[:, 1 * H:2 * H])
        g_g = jnp.tanh(gates[:, 2 * H:3 * H])
        o_g = jax.nn.sigmoid(gates[:, 3 * H:4 * H])
        c = f_g * c + i_g * g_g
        h = o_g * jnp.tanh(c)
    logits = h @ w_out.T + b_out
    return jax.nn.log_softmax(logits, axis=-1)


def init_params(key, input_dim, hidden_dim, output_size):
    """Deterministic synthetic init mimicking PyTorch uniform(-1/sqrt(H), 1/sqrt(H))."""
    k = jax.random.split(key, 6)
    bound = 1.0 / jnp.sqrt(jnp.float32(hidden_dim))
    u = lambda kk, shape: jax.random.uniform(kk, shape, jnp.float32, -bound, bound)
    w_ih = u(k[0], (4 * hidden_dim, input_dim))
    w_hh = u(k[1], (4 * hidden_dim, hidden_dim))
    b_ih = u(k[2], (4 * hidden_dim,))
    b_hh = u(k[3], (4 * hidden_dim,))
    w_out = u(k[4], (output_size, hidden_dim))
    b_out = u(k[5], (output_size,))
    return w_ih, w_hh, b_ih, b_hh, w_out, b_out


if __name__ == "__main__":
    batch, seq, input_dim, hidden_dim, output_size = 2, 8, 16, 32, 4

    key = jax.random.PRNGKey(0)
    kx, kp = jax.random.split(key)
    x = jax.random.normal(kx, (batch, seq, input_dim), jnp.float32)
    raw_params = init_params(kp, input_dim, hidden_dim, output_size)

    # One-time weight repacking (cached outside the steady-state forward path).
    packed = pack_params(*raw_params)
    packed = {k: (jax.block_until_ready(v) if isinstance(v, jax.Array) else v)
              for k, v in packed.items()}

    log_probs = lstm_classifier_forward(x, packed)
    log_probs = jax.block_until_ready(log_probs)

    assert log_probs.shape == (batch, output_size)

    # log-softmax rows should exponentiate and sum to ~1.
    row_sums = jnp.sum(jnp.exp(log_probs), axis=-1)
    assert bool(jnp.all(jnp.abs(row_sums - 1.0) < 1e-4))

    # Compare against a pure-JAX f32 reference (loose tol: bf16 MXU operands).
    ref = _reference_forward(x, *raw_params)
    assert bool(jnp.all(jnp.abs(log_probs - ref) < 5e-2)), "mismatch vs f32 reference"

    print("KERNEL_OK")
</pallas_src>

<mosaic_0001>
module attributes {stable_mosaic.version = 11 : i64} {
  func.func @_lstm_classifier_kernel(%arg0: i32, %arg1: i32, %arg2: memref<1x8x8x16xbf16, #tpu.memory_space<vmem>>, %arg3: memref<16x512xbf16, #tpu.memory_space<vmem>>, %arg4: memref<128x512xbf16, #tpu.memory_space<vmem>>, %arg5: memref<1x512xf32, #tpu.memory_space<vmem>>, %arg6: memref<128x128xf32, #tpu.memory_space<vmem>>, %arg7: memref<1x128xf32, #tpu.memory_space<vmem>>, %arg8: memref<8x128xf32, #tpu.memory_space<vmem>>, %arg9: memref<8x128xf32, #tpu.memory_space<vmem>>, %arg10: memref<8x128xf32, #tpu.memory_space<vmem>>, %arg11: memref<8x8x512xbf16, #tpu.memory_space<vmem>>) attributes {dimension_semantics = [#tpu.dimension_semantics<parallel>, #tpu.dimension_semantics<arbitrary>], iteration_bounds = array<i64: 1, 1>, scalar_prefetch = 0 : i64, scratch_operands = 3 : i64, tpu.core_type = #tpu.core_type<tc>, window_params = [{transform_indices = @transform_0, window_bounds = array<i64: 1, 8, 8, 16>}, {pipeline_mode = #tpu.pipeline_mode<synchronous>, transform_indices = @transform_1, window_bounds = array<i64: 16, 512>}, {pipeline_mode = #tpu.pipeline_mode<synchronous>, transform_indices = @transform_2, window_bounds = array<i64: 128, 512>}, {pipeline_mode = #tpu.pipeline_mode<synchronous>, transform_indices = @transform_3, window_bounds = array<i64: 1, 512>}, {pipeline_mode = #tpu.pipeline_mode<synchronous>, transform_indices = @transform_4, window_bounds = array<i64: 128, 128>}, {pipeline_mode = #tpu.pipeline_mode<synchronous>, transform_indices = @transform_5, window_bounds = array<i64: 1, 128>}, {transform_indices = @transform_6, window_bounds = array<i64: 8, 128>}]} {
    %c0_i32 = arith.constant 0 : i32
    %0 = arith.cmpi eq, %arg1, %c0_i32 : i32
    %1 = arith.extui %0 : i1 to i32
    %c0_i32_0 = arith.constant 0 : i32
    %2 = arith.cmpi ne, %1, %c0_i32_0 : i32
    scf.if %2 {
      %cst_155 = arith.constant 0.000000e+00 : f32
      %381 = vector.broadcast %cst_155 : f32 to vector<8x128xf32>
      %c0_156 = arith.constant 0 : index
      %c0_157 = arith.constant 0 : index
      %382 = vector.load %arg9[%c0_156, %c0_157] : memref<8x128xf32, #tpu.memory_space<vmem>>, vector<8x128xf32>
      tpu.vector_store %arg9[%c0_156, %c0_157], %381 {strides = array<i32>} : memref<8x128xf32, #tpu.memory_space<vmem>>, vector<8x128xf32>,
      %cst_158 = arith.constant 0.000000e+00 : f32
      %383 = vector.broadcast %cst_158 : f32 to vector<8x128xf32>
      %c0_159 = arith.constant 0 : index
      %c0_160 = arith.constant 0 : index
      %384 = vector.load %arg10[%c0_159, %c0_160] : memref<8x128xf32, #tpu.memory_space<vmem>>, vector<8x128xf32>
      tpu.vector_store %arg10[%c0_159, %c0_160], %383 {strides = array<i32>} : memref<8x128xf32, #tpu.memory_space<vmem>>, vector<8x128xf32>,
    } else {
    }
    %c0 = arith.constant 0 : index
    %c0_1 = arith.constant 0 : index
    %c0_2 = arith.constant 0 : index
    %c0_3 = arith.constant 0 : index
    %3 = vector.load %arg2[%c0, %c0_1, %c0_2, %c0_3] : memref<1x8x8x16xbf16, #tpu.memory_space<vmem>>, vector<1x8x8x16xbf16>
    %4 = vector.shape_cast %3 : vector<1x8x8x16xbf16> to vector<8x8x16xbf16>
    %5 = vector.shape_cast %4 : vector<8x8x16xbf16> to vector<64x16xbf16>
    %c0_4 = arith.constant 0 : index
    %c0_5 = arith.constant 0 : index
    %6 = vector.load %arg3[%c0_4, %c0_5] : memref<16x512xbf16, #tpu.memory_space<vmem>>, vector<16x512xbf16>
    %cst = arith.constant dense<0.000000e+00> : vector<64x512xf32>
    %7 = tpu.matmul %5, %6, %cst {dimension_numbers = #tpu.dot_dimension_numbers<[1], [0], [0], [1], [0, 0, 1, 1], [], []>} : vector<64x16xbf16>, vector<16x512xbf16>, vector<64x512xf32> -> vector<64x512xf32>
    %c0_6 = arith.constant 0 : index
    %c0_7 = arith.constant 0 : index
    %8 = vector.load %arg5[%c0_6, %c0_7] : memref<1x512xf32, #tpu.memory_space<vmem>>, vector<1x512xf32>
    %9 = vector.broadcast %8 : vector<1x512xf32> to vector<64x512xf32>
    %10 = arith.addf %7, %9 : vector<64x512xf32>
    %11 = vector.shape_cast %10 : vector<64x512xf32> to vector<8x8x512xf32>
    %12 = arith.truncf %11 : vector<8x8x512xf32> to vector<8x8x512xbf16>
    %c0_8 = arith.constant 0 : index
    %c0_9 = arith.constant 0 : index
    %c0_10 = arith.constant 0 : index
    %13 = vector.load %arg11[%c0_8, %c0_9, %c0_10] : memref<8x8x512xbf16, #tpu.memory_space<vmem>>, vector<8x8x512xbf16>
    tpu.vector_store %arg11[%c0_8, %c0_9, %c0_10], %12 {strides = array<i32>} : memref<8x8x512xbf16, #tpu.memory_space<vmem>>, vector<8x8x512xbf16>,
    %c0_11 = arith.constant 0 : index
    %c0_12 = arith.constant 0 : index
    %14 = vector.load %arg9[%c0_11, %c0_12] : memref<8x128xf32, #tpu.memory_space<vmem>>, vector<8x128xf32>
    %c0_13 = arith.constant 0 : index
    %c0_14 = arith.constant 0 : index
    %15 = vector.load %arg10[%c0_13, %c0_14] : memref<8x128xf32, #tpu.memory_space<vmem>>, vector<8x128xf32>
    %c0_i32_15 = arith.constant 0 : i32
    %16 = arith.truncf %14 : vector<8x128xf32> to vector<8x128xbf16>
    %17 = arith.index_cast %c0_i32_15 : i32 to index
    %c0_16 = arith.constant 0 : index
    %c0_17 = arith.constant 0 : index
    %18 = vector.load %arg11[%17, %c0_16, %c0_17] : memref<8x8x512xbf16, #tpu.memory_space<vmem>>, vector<1x8x512xbf16>
    %19 = vector.shape_cast %18 : vector<1x8x512xbf16> to vector<8x512xbf16>
    %20 = vector.extract_strided_slice %19 {offsets = [0, 128], sizes = [8, 128], strides = [1, 1]} : vector<8x512xbf16> to vector<8x128xbf16>
    %21 = arith.extf %20 : vector<8x128xbf16> to vector<8x128xf32>
    %c0_18 = arith.constant 0 : index
    %c128 = arith.constant 128 : index
    %22 = vector.load %arg4[%c0_18, %c128] : memref<128x512xbf16, #tpu.memory_space<vmem>>, vector<128x128xbf16>
    %cst_19 = arith.constant dense<0.000000e+00> : vector<8x128xf32>
    %23 = tpu.matmul %16, %22, %cst_19 {dimension_numbers = #tpu.dot_dimension_numbers<[1], [0], [0], [1], [0, 0, 1, 1], [], []>} : vector<8x128xbf16>, vector<128x128xbf16>, vector<8x128xf32> -> vector<8x128xf32>
    %24 = arith.addf %21, %23 : vector<8x128xf32>
    %25 = arith.negf %24 : vector<8x128xf32>
    %26 = math.exp %25 : vector<8x128xf32>
    %cst_20 = arith.constant 1.000000e+00 : f32
    %27 = vector.broadcast %cst_20 : f32 to vector<8x128xf32>
    %28 = arith.addf %27, %26 : vector<8x128xf32>
    %29 = arith.divf %27, %28 : vector<8x128xf32>
    %30 = arith.mulf %29, %15 : vector<8x128xf32>
    %31 = vector.extract_strided_slice %19 {offsets = [0, 0], sizes = [8, 128], strides = [1, 1]} : vector<8x512xbf16> to vector<8x128xbf16>
    %32 = arith.extf %31 : vector<8x128xbf16> to vector<8x128xf32>
    %c0_21 = arith.constant 0 : index
    %c0_22 = arith.constant 0 : index
    %33 = vector.load %arg4[%c0_21, %c0_22] : memref<128x512xbf16, #tpu.memory_space<vmem>>, vector<128x128xbf16>
    %cst_23 = arith.constant dense<0.000000e+00> : vector<8x128xf32>
    %34 = tpu.matmul %16, %33, %cst_23 {dimension_numbers = #tpu.dot_dimension_numbers<[1], [0], [0], [1], [0, 0, 1, 1], [], []>} : vector<8x128xbf16>, vector<128x128xbf16>, vector<8x128xf32> -> vector<8x128xf32>
    %35 = arith.addf %32, %34 : vector<8x128xf32>
    %36 = arith.negf %35 : vector<8x128xf32>
    %37 = math.exp %36 : vector<8x128xf32>
    %cst_24 = arith.constant 1.000000e+00 : f32
    %38 = vector.broadcast %cst_24 : f32 to vector<8x128xf32>
    %39 = arith.addf %38, %37 : vector<8x128xf32>
    %40 = arith.divf %38, %39 : vector<8x128xf32>
    %41 = vector.extract_strided_slice %19 {offsets = [0, 256], sizes = [8, 128], strides = [1, 1]} : vector<8x512xbf16> to vector<8x128xbf16>
    %42 = arith.extf %41 : vector<8x128xbf16> to vector<8x128xf32>
    %c0_25 = arith.constant 0 : index
    %c256 = arith.constant 256 : index
    %43 = vector.load %arg4[%c0_25, %c256] : memref<128x512xbf16, #tpu.memory_space<vmem>>, vector<128x128xbf16>
    %cst_26 = arith.constant dense<0.000000e+00> : vector<8x128xf32>
    %44 = tpu.matmul %16, %43, %cst_26 {dimension_numbers = #tpu.dot_dimension_numbers<[1], [0], [0], [1], [0, 0, 1, 1], [], []>} : vector<8x128xbf16>, vector<128x128xbf16>, vector<8x128xf32> -> vector<8x128xf32>
    %45 = arith.addf %42, %44 : vector<8x128xf32>
    %46 = math.tanh %45 : vector<8x128xf32>
    %47 = arith.mulf %40, %46 : vector<8x128xf32>
    %48 = arith.addf %30, %47 : vector<8x128xf32>
    %49 = vector.extract_strided_slice %19 {offsets = [0, 384], sizes = [8, 128], strides = [1, 1]} : vector<8x512xbf16> to vector<8x128xbf16>
    %50 = arith.extf %49 : vector<8x128xbf16> to vector<8x128xf32>
    %c0_27 = arith.constant 0 : index
    %c384 = arith.constant 384 : index
    %51 = vector.load %arg4[%c0_27, %c384] : memref<128x512xbf16, #tpu.memory_space<vmem>>, vector<128x128xbf16>
    %cst_28 = arith.constant dense<0.000000e+00> : vector<8x128xf32>
    %52 = tpu.matmul %16, %51, %cst_28 {dimension_numbers = #tpu.dot_dimension_numbers<[1], [0], [0], [1], [0, 0, 1, 1], [], []>} : vector<8x128xbf16>, vector<128x128xbf16>, vector<8x128xf32> -> vector<8x128xf32>
    %53 = arith.addf %50, %52 : vector<8x128xf32>
    %54 = arith.negf %53 : vector<8x128xf32>
    %55 = math.exp %54 : vector<8x128xf32>
    %cst_29 = arith.constant 1.000000e+00 : f32
    %56 = vector.broadcast %cst_29 : f32 to vector<8x128xf32>
    %57 = arith.addf %56, %55 : vector<8x128xf32>
    %58 = arith.divf %56, %57 : vector<8x128xf32>
    %59 = math.tanh %48 : vector<8x128xf32>
    %60 = arith.mulf %58, %59 : vector<8x128xf32>
    %c1_i32 = arith.constant 1 : i32
    %61 = arith.truncf %60 : vector<8x128xf32> to vector<8x128xbf16>
    %62 = arith.index_cast %c1_i32 : i32 to index
    %c0_30 = arith.constant 0 : index
    %c0_31 = arith.constant 0 : index
    %63 = vector.load %arg11[%62, %c0_30, %c0_31] : memref<8x8x512xbf16, #tpu.memory_space<vmem>>, vector<1x8x512xbf16>
    %64 = vector.shape_cast %63 : vector<1x8x512xbf16> to vector<8x512xbf16>
    %65 = vector.extract_strided_slice %64 {offsets = [0, 128], sizes = [8, 128], strides = [1, 1]} : vector<8x512xbf16> to vector<8x128xbf16>
    %66 = arith.extf %65 : vector<8x128xbf16> to vector<8x128xf32>
    %c0_32 = arith.constant 0 : index
    %c128_33 = arith.constant 128 : index
    %67 = vector.load %arg4[%c0_32, %c128_33] : memref<128x512xbf16, #tpu.memory_space<vmem>>, vector<128x128xbf16>
    %cst_34 = arith.constant dense<0.000000e+00> : vector<8x128xf32>
    %68 = tpu.matmul %61, %67, %cst_34 {dimension_numbers = #tpu.dot_dimension_numbers<[1], [0], [0], [1], [0, 0, 1, 1], [], []>} : vector<8x128xbf16>, vector<128x128xbf16>, vector<8x128xf32> -> vector<8x128xf32>
    %69 = arith.addf %66, %68 : vector<8x128xf32>
    %70 = arith.negf %69 : vector<8x128xf32>
    %71 = math.exp %70 : vector<8x128xf32>
    %cst_35 = arith.constant 1.000000e+00 : f32
    %72 = vector.broadcast %cst_35 : f32 to vector<8x128xf32>
    %73 = arith.addf %72, %71 : vector<8x128xf32>
    %74 = arith.divf %72, %73 : vector<8x128xf32>
    %75 = arith.mulf %74, %48 : vector<8x128xf32>
    %76 = vector.extract_strided_slice %64 {offsets = [0, 0], sizes = [8, 128], strides = [1, 1]} : vector<8x512xbf16> to vector<8x128xbf16>
    %77 = arith.extf %76 : vector<8x128xbf16> to vector<8x128xf32>
    %c0_36 = arith.constant 0 : index
    %c0_37 = arith.constant 0 : index
    %78 = vector.load %arg4[%c0_36, %c0_37] : memref<128x512xbf16, #tpu.memory_space<vmem>>, vector<128x128xbf16>
    %cst_38 = arith.constant dense<0.000000e+00> : vector<8x128xf32>
    %79 = tpu.matmul %61, %78, %cst_38 {dimension_numbers = #tpu.dot_dimension_numbers<[1], [0], [0], [1], [0, 0, 1, 1], [], []>} : vector<8x128xbf16>, vector<128x128xbf16>, vector<8x128xf32> -> vector<8x128xf32>
    %80 = arith.addf %77, %79 : vector<8x128xf32>
    %81 = arith.negf %80 : vector<8x128xf32>
    %82 = math.exp %81 : vector<8x128xf32>
    %cst_39 = arith.constant 1.000000e+00 : f32
    %83 = vector.broadcast %cst_39 : f32 to vector<8x128xf32>
    %84 = arith.addf %83, %82 : vector<8x128xf32>
    %85 = arith.divf %83, %84 : vector<8x128xf32>
    %86 = vector.extract_strided_slice %64 {offsets = [0, 256], sizes = [8, 128], strides = [1, 1]} : vector<8x512xbf16> to vector<8x128xbf16>
    %87 = arith.extf %86 : vector<8x128xbf16> to vector<8x128xf32>
    %c0_40 = arith.constant 0 : index
    %c256_41 = arith.constant 256 : index
    %88 = vector.load %arg4[%c0_40, %c256_41] : memref<128x512xbf16, #tpu.memory_space<vmem>>, vector<128x128xbf16>
    %cst_42 = arith.constant dense<0.000000e+00> : vector<8x128xf32>
    %89 = tpu.matmul %61, %88, %cst_42 {dimension_numbers = #tpu.dot_dimension_numbers<[1], [0], [0], [1], [0, 0, 1, 1], [], []>} : vector<8x128xbf16>, vector<128x128xbf16>, vector<8x128xf32> -> vector<8x128xf32>
    %90 = arith.addf %87, %89 : vector<8x128xf32>
    %91 = math.tanh %90 : vector<8x128xf32>
    %92 = arith.mulf %85, %91 : vector<8x128xf32>
    %93 = arith.addf %75, %92 : vector<8x128xf32>
    %94 = vector.extract_strided_slice %64 {offsets = [0, 384], sizes = [8, 128], strides = [1, 1]} : vector<8x512xbf16> to vector<8x128xbf16>
    %95 = arith.extf %94 : vector<8x128xbf16> to vector<8x128xf32>
    %c0_43 = arith.constant 0 : index
    %c384_44 = arith.constant 384 : index
    %96 = vector.load %arg4[%c0_43, %c384_44] : memref<128x512xbf16, #tpu.memory_space<vmem>>, vector<128x128xbf16>
    %cst_45 = arith.constant dense<0.000000e+00> : vector<8x128xf32>
    %97 = tpu.matmul %61, %96, %cst_45 {dimension_numbers = #tpu.dot_dimension_numbers<[1], [0], [0], [1], [0, 0, 1, 1], [], []>} : vector<8x128xbf16>, vector<128x128xbf16>, vector<8x128xf32> -> vector<8x128xf32>
    %98 = arith.addf %95, %97 : vector<8x128xf32>
    %99 = arith.negf %98 : vector<8x128xf32>
    %100 = math.exp %99 : vector<8x128xf32>
    %cst_46 = arith.constant 1.000000e+00 : f32
    %101 = vector.broadcast %cst_46 : f32 to vector<8x128xf32>
    %102 = arith.addf %101, %100 : vector<8x128xf32>
    %103 = arith.divf %101, %102 : vector<8x128xf32>
    %104 = math.tanh %93 : vector<8x128xf32>
    %105 = arith.mulf %103, %104 : vector<8x128xf32>
    %c2_i32 = arith.constant 2 : i32
    %106 = arith.truncf %105 : vector<8x128xf32> to vector<8x128xbf16>
    %107 = arith.index_cast %c2_i32 : i32 to index
    %c0_47 = arith.constant 0 : index
    %c0_48 = arith.constant 0 : index
    %108 = vector.load %arg11[%107, %c0_47, %c0_48] : memref<8x8x512xbf16, #tpu.memory_space<vmem>>, vector<1x8x512xbf16>
    %109 = vector.shape_cast %108 : vector<1x8x512xbf16> to vector<8x512xbf16>
    %110 = vector.extract_strided_slice %109 {offsets = [0, 128], sizes = [8, 128], strides = [1, 1]} : vector<8x512xbf16> to vector<8x128xbf16>
    %111 = arith.extf %110 : vector<8x128xbf16> to vector<8x128xf32>
    %c0_49 = arith.constant 0 : index
    %c128_50 = arith.constant 128 : index
    %112 = vector.load %arg4[%c0_49, %c128_50] : memref<128x512xbf16, #tpu.memory_space<vmem>>, vector<128x128xbf16>
    %cst_51 = arith.constant dense<0.000000e+00> : vector<8x128xf32>
    %113 = tpu.matmul %106, %112, %cst_51 {dimension_numbers = #tpu.dot_dimension_numbers<[1], [0], [0], [1], [0, 0, 1, 1], [], []>} : vector<8x128xbf16>, vector<128x128xbf16>, vector<8x128xf32> -> vector<8x128xf32>
    %114 = arith.addf %111, %113 : vector<8x128xf32>
    %115 = arith.negf %114 : vector<8x128xf32>
    %116 = math.exp %115 : vector<8x128xf32>
    %cst_52 = arith.constant 1.000000e+00 : f32
    %117 = vector.broadcast %cst_52 : f32 to vector<8x128xf32>
    %118 = arith.addf %117, %116 : vector<8x128xf32>
    %119 = arith.divf %117, %118 : vector<8x128xf32>
    %120 = arith.mulf %119, %93 : vector<8x128xf32>
    %121 = vector.extract_strided_slice %109 {offsets = [0, 0], sizes = [8, 128], strides = [1, 1]} : vector<8x512xbf16> to vector<8x128xbf16>
    %122 = arith.extf %121 : vector<8x128xbf16> to vector<8x128xf32>
    %c0_53 = arith.constant 0 : index
    %c0_54 = arith.constant 0 : index
    %123 = vector.load %arg4[%c0_53, %c0_54] : memref<128x512xbf16, #tpu.memory_space<vmem>>, vector<128x128xbf16>
    %cst_55 = arith.constant dense<0.000000e+00> : vector<8x128xf32>
    %124 = tpu.matmul %106, %123, %cst_55 {dimension_numbers = #tpu.dot_dimension_numbers<[1], [0], [0], [1], [0, 0, 1, 1], [], []>} : vector<8x128xbf16>, vector<128x128xbf16>, vector<8x128xf32> -> vector<8x128xf32>
    %125 = arith.addf %122, %124 : vector<8x128xf32>
    %126 = arith.negf %125 : vector<8x128xf32>
    %127 = math.exp %126 : vector<8x128xf32>
    %cst_56 = arith.constant 1.000000e+00 : f32
    %128 = vector.broadcast %cst_56 : f32 to vector<8x128xf32>
    %129 = arith.addf %128, %127 : vector<8x128xf32>
    %130 = arith.divf %128, %129 : vector<8x128xf32>
    %131 = vector.extract_strided_slice %109 {offsets = [0, 256], sizes = [8, 128], strides = [1, 1]} : vector<8x512xbf16> to vector<8x128xbf16>
    %132 = arith.extf %131 : vector<8x128xbf16> to vector<8x128xf32>
    %c0_57 = arith.constant 0 : index
    %c256_58 = arith.constant 256 : index
    %133 = vector.load %arg4[%c0_57, %c256_58] : memref<128x512xbf16, #tpu.memory_space<vmem>>, vector<128x128xbf16>
    %cst_59 = arith.constant dense<0.000000e+00> : vector<8x128xf32>
    %134 = tpu.matmul %106, %133, %cst_59 {dimension_numbers = #tpu.dot_dimension_numbers<[1], [0], [0], [1], [0, 0, 1, 1], [], []>} : vector<8x128xbf16>, vector<128x128xbf16>, vector<8x128xf32> -> vector<8x128xf32>
    %135 = arith.addf %132, %134 : vector<8x128xf32>
    %136 = math.tanh %135 : vector<8x128xf32>
    %137 = arith.mulf %130, %136 : vector<8x128xf32>
    %138 = arith.addf %120, %137 : vector<8x128xf32>
    %139 = vector.extract_strided_slice %109 {offsets = [0, 384], sizes = [8, 128], strides = [1, 1]} : vector<8x512xbf16> to vector<8x128xbf16>
    %140 = arith.extf %139 : vector<8x128xbf16> to vector<8x128xf32>
    %c0_60 = arith.constant 0 : index
    %c384_61 = arith.constant 384 : index
    %141 = vector.load %arg4[%c0_60, %c384_61] : memref<128x512xbf16, #tpu.memory_space<vmem>>, vector<128x128xbf16>
    %cst_62 = arith.constant dense<0.000000e+00> : vector<8x128xf32>
    %142 = tpu.matmul %106, %141, %cst_62 {dimension_numbers = #tpu.dot_dimension_numbers<[1], [0], [0], [1], [0, 0, 1, 1], [], []>} : vector<8x128xbf16>, vector<128x128xbf16>, vector<8x128xf32> -> vector<8x128xf32>
    %143 = arith.addf %140, %142 : vector<8x128xf32>
    %144 = arith.negf %143 : vector<8x128xf32>
    %145 = math.exp %144 : vector<8x128xf32>
    %cst_63 = arith.constant 1.000000e+00 : f32
    %146 = vector.broadcast %cst_63 : f32 to vector<8x128xf32>
    %147 = arith.addf %146, %145 : vector<8x128xf32>
    %148 = arith.divf %146, %147 : vector<8x128xf32>
    %149 = math.tanh %138 : vector<8x128xf32>
    %150 = arith.mulf %148, %149 : vector<8x128xf32>
    %c3_i32 = arith.constant 3 : i32
    %151 = arith.truncf %150 : vector<8x128xf32> to vector<8x128xbf16>
    %152 = arith.index_cast %c3_i32 : i32 to index
    %c0_64 = arith.constant 0 : index
    %c0_65 = arith.constant 0 : index
    %153 = vector.load %arg11[%152, %c0_64, %c0_65] : memref<8x8x512xbf16, #tpu.memory_space<vmem>>, vector<1x8x512xbf16>
    %154 = vector.shape_cast %153 : vector<1x8x512xbf16> to vector<8x512xbf16>
    %155 = vector.extract_strided_slice %154 {offsets = [0, 128], sizes = [8, 128], strides = [1, 1]} : vector<8x512xbf16> to vector<8x128xbf16>
    %156 = arith.extf %155 : vector<8x128xbf16> to vector<8x128xf32>
    %c0_66 = arith.constant 0 : index
    %c128_67 = arith.constant 128 : index
    %157 = vector.load %arg4[%c0_66, %c128_67] : memref<128x512xbf16, #tpu.memory_space<vmem>>, vector<128x128xbf16>
    %cst_68 = arith.constant dense<0.000000e+00> : vector<8x128xf32>
    %158 = tpu.matmul %151, %157, %cst_68 {dimension_numbers = #tpu.dot_dimension_numbers<[1], [0], [0], [1], [0, 0, 1, 1], [], []>} : vector<8x128xbf16>, vector<128x128xbf16>, vector<8x128xf32> -> vector<8x128xf32>
    %159 = arith.addf %156, %158 : vector<8x128xf32>
    %160 = arith.negf %159 : vector<8x128xf32>
    %161 = math.exp %160 : vector<8x128xf32>
    %cst_69 = arith.constant 1.000000e+00 : f32
    %162 = vector.broadcast %cst_69 : f32 to vector<8x128xf32>
    %163 = arith.addf %162, %161 : vector<8x128xf32>
    %164 = arith.divf %162, %163 : vector<8x128xf32>
    %165 = arith.mulf %164, %138 : vector<8x128xf32>
    %166 = vector.extract_strided_slice %154 {offsets = [0, 0], sizes = [8, 128], strides = [1, 1]} : vector<8x512xbf16> to vector<8x128xbf16>
    %167 = arith.extf %166 : vector<8x128xbf16> to vector<8x128xf32>
    %c0_70 = arith.constant 0 : index
    %c0_71 = arith.constant 0 : index
    %168 = vector.load %arg4[%c0_70, %c0_71] : memref<128x512xbf16, #tpu.memory_space<vmem>>, vector<128x128xbf16>
    %cst_72 = arith.constant dense<0.000000e+00> : vector<8x128xf32>
    %169 = tpu.matmul %151, %168, %cst_72 {dimension_numbers = #tpu.dot_dimension_numbers<[1], [0], [0], [1], [0, 0, 1, 1], [], []>} : vector<8x128xbf16>, vector<128x128xbf16>, vector<8x128xf32> -> vector<8x128xf32>
    %170 = arith.addf %167, %169 : vector<8x128xf32>
    %171 = arith.negf %170 : vector<8x128xf32>
    %172 = math.exp %171 : vector<8x128xf32>
    %cst_73 = arith.constant 1.000000e+00 : f32
    %173 = vector.broadcast %cst_73 : f32 to vector<8x128xf32>
    %174 = arith.addf %173, %172 : vector<8x128xf32>
    %175 = arith.divf %173, %174 : vector<8x128xf32>
    %176 = vector.extract_strided_slice %154 {offsets = [0, 256], sizes = [8, 128], strides = [1, 1]} : vector<8x512xbf16> to vector<8x128xbf16>
    %177 = arith.extf %176 : vector<8x128xbf16> to vector<8x128xf32>
    %c0_74 = arith.constant 0 : index
    %c256_75 = arith.constant 256 : index
    %178 = vector.load %arg4[%c0_74, %c256_75] : memref<128x512xbf16, #tpu.memory_space<vmem>>, vector<128x128xbf16>
    %cst_76 = arith.constant dense<0.000000e+00> : vector<8x128xf32>
    %179 = tpu.matmul %151, %178, %cst_76 {dimension_numbers = #tpu.dot_dimension_numbers<[1], [0], [0], [1], [0, 0, 1, 1], [], []>} : vector<8x128xbf16>, vector<128x128xbf16>, vector<8x128xf32> -> vector<8x128xf32>
    %180 = arith.addf %177, %179 : vector<8x128xf32>
    %181 = math.tanh %180 : vector<8x128xf32>
    %182 = arith.mulf %175, %181 : vector<8x128xf32>
    %183 = arith.addf %165, %182 : vector<8x128xf32>
    %184 = vector.extract_strided_slice %154 {offsets = [0, 384], sizes = [8, 128], strides = [1, 1]} : vector<8x512xbf16> to vector<8x128xbf16>
    %185 = arith.extf %184 : vector<8x128xbf16> to vector<8x128xf32>
    %c0_77 = arith.constant 0 : index
    %c384_78 = arith.constant 384 : index
    %186 = vector.load %arg4[%c0_77, %c384_78] : memref<128x512xbf16, #tpu.memory_space<vmem>>, vector<128x128xbf16>
    %cst_79 = arith.constant dense<0.000000e+00> : vector<8x128xf32>
    %187 = tpu.matmul %151, %186, %cst_79 {dimension_numbers = #tpu.dot_dimension_numbers<[1], [0], [0], [1], [0, 0, 1, 1], [], []>} : vector<8x128xbf16>, vector<128x128xbf16>, vector<8x128xf32> -> vector<8x128xf32>
    %188 = arith.addf %185, %187 : vector<8x128xf32>
    %189 = arith.negf %188 : vector<8x128xf32>
    %190 = math.exp %189 : vector<8x128xf32>
    %cst_80 = arith.constant 1.000000e+00 : f32
    %191 = vector.broadcast %cst_80 : f32 to vector<8x128xf32>
    %192 = arith.addf %191, %190 : vector<8x128xf32>
    %193 = arith.divf %191, %192 : vector<8x128xf32>
    %194 = math.tanh %183 : vector<8x128xf32>
    %195 = arith.mulf %193, %194 : vector<8x128xf32>
    %c4_i32 = arith.constant 4 : i32
    %196 = arith.truncf %195 : vector<8x128xf32> to vector<8x128xbf16>
    %197 = arith.index_cast %c4_i32 : i32 to index
    %c0_81 = arith.constant 0 : index
    %c0_82 = arith.constant 0 : index
    %198 = vector.load %arg11[%197, %c0_81, %c0_82] : memref<8x8x512xbf16, #tpu.memory_space<vmem>>, vector<1x8x512xbf16>
    %199 = vector.shape_cast %198 : vector<1x8x512xbf16> to vector<8x512xbf16>
    %200 = vector.extract_strided_slice %199 {offsets = [0, 128], sizes = [8, 128], strides = [1, 1]} : vector<8x512xbf16> to vector<8x128xbf16>
    %201 = arith.extf %200 : vector<8x128xbf16> to vector<8x128xf32>
    %c0_83 = arith.constant 0 : index
    %c128_84 = arith.constant 128 : index
    %202 = vector.load %arg4[%c0_83, %c128_84] : memref<128x512xbf16, #tpu.memory_space<vmem>>, vector<128x128xbf16>
    %cst_85 = arith.constant dense<0.000000e+00> : vector<8x128xf32>
    %203 = tpu.matmul %196, %202, %cst_85 {dimension_numbers = #tpu.dot_dimension_numbers<[1], [0], [0], [1], [0, 0, 1, 1], [], []>} : vector<8x128xbf16>, vector<128x128xbf16>, vector<8x128xf32> -> vector<8x128xf32>
    %204 = arith.addf %201, %203 : vector<8x128xf32>
    %205 = arith.negf %204 : vector<8x128xf32>
    %206 = math.exp %205 : vector<8x128xf32>
    %cst_86 = arith.constant 1.000000e+00 : f32
    %207 = vector.broadcast %cst_86 : f32 to vector<8x128xf32>
    %208 = arith.addf %207, %206 : vector<8x128xf32>
    %209 = arith.divf %207, %208 : vector<8x128xf32>
    %210 = arith.mulf %209, %183 : vector<8x128xf32>
    %211 = vector.extract_strided_slice %199 {offsets = [0, 0], sizes = [8, 128], strides = [1, 1]} : vector<8x512xbf16> to vector<8x128xbf16>
    %212 = arith.extf %211 : vector<8x128xbf16> to vector<8x128xf32>
    %c0_87 = arith.constant 0 : index
    %c0_88 = arith.constant 0 : index
    %213 = vector.load %arg4[%c0_87, %c0_88] : memref<128x512xbf16, #tpu.memory_space<vmem>>, vector<128x128xbf16>
    %cst_89 = arith.constant dense<0.000000e+00> : vector<8x128xf32>
    %214 = tpu.matmul %196, %213, %cst_89 {dimension_numbers = #tpu.dot_dimension_numbers<[1], [0], [0], [1], [0, 0, 1, 1], [], []>} : vector<8x128xbf16>, vector<128x128xbf16>, vector<8x128xf32> -> vector<8x128xf32>
    %215 = arith.addf %212, %214 : vector<8x128xf32>
    %216 = arith.negf %215 : vector<8x128xf32>
    %217 = math.exp %216 : vector<8x128xf32>
    %cst_90 = arith.constant 1.000000e+00 : f32
    %218 = vector.broadcast %cst_90 : f32 to vector<8x128xf32>
    %219 = arith.addf %218, %217 : vector<8x128xf32>
    %220 = arith.divf %218, %219 : vector<8x128xf32>
    %221 = vector.extract_strided_slice %199 {offsets = [0, 256], sizes = [8, 128], strides = [1, 1]} : vector<8x512xbf16> to vector<8x128xbf16>
    %222 = arith.extf %221 : vector<8x128xbf16> to vector<8x128xf32>
    %c0_91 = arith.constant 0 : index
    %c256_92 = arith.constant 256 : index
    %223 = vector.load %arg4[%c0_91, %c256_92] : memref<128x512xbf16, #tpu.memory_space<vmem>>, vector<128x128xbf16>
    %cst_93 = arith.constant dense<0.000000e+00> : vector<8x128xf32>
    %224 = tpu.matmul %196, %223, %cst_93 {dimension_numbers = #tpu.dot_dimension_numbers<[1], [0], [0], [1], [0, 0, 1, 1], [], []>} : vector<8x128xbf16>, vector<128x128xbf16>, vector<8x128xf32> -> vector<8x128xf32>
    %225 = arith.addf %222, %224 : vector<8x128xf32>
    %226 = math.tanh %225 : vector<8x128xf32>
    %227 = arith.mulf %220, %226 : vector<8x128xf32>
    %228 = arith.addf %210, %227 : vector<8x128xf32>
    %229 = vector.extract_strided_slice %199 {offsets = [0, 384], sizes = [8, 128], strides = [1, 1]} : vector<8x512xbf16> to vector<8x128xbf16>
    %230 = arith.extf %229 : vector<8x128xbf16> to vector<8x128xf32>
    %c0_94 = arith.constant 0 : index
    %c384_95 = arith.constant 384 : index
    %231 = vector.load %arg4[%c0_94, %c384_95] : memref<128x512xbf16, #tpu.memory_space<vmem>>, vector<128x128xbf16>
    %cst_96 = arith.constant dense<0.000000e+00> : vector<8x128xf32>
    %232 = tpu.matmul %196, %231, %cst_96 {dimension_numbers = #tpu.dot_dimension_numbers<[1], [0], [0], [1], [0, 0, 1, 1], [], []>} : vector<8x128xbf16>, vector<128x128xbf16>, vector<8x128xf32> -> vector<8x128xf32>
    %233 = arith.addf %230, %232 : vector<8x128xf32>
    %234 = arith.negf %233 : vector<8x128xf32>
    %235 = math.exp %234 : vector<8x128xf32>
    %cst_97 = arith.constant 1.000000e+00 : f32
    %236 = vector.broadcast %cst_97 : f32 to vector<8x128xf32>
    %237 = arith.addf %236, %235 : vector<8x128xf32>
    %238 = arith.divf %236, %237 : vector<8x128xf32>
    %239 = math.tanh %228 : vector<8x128xf32>
    %240 = arith.mulf %238, %239 : vector<8x128xf32>
    %c5_i32 = arith.constant 5 : i32
    %241 = arith.truncf %240 : vector<8x128xf32> to vector<8x128xbf16>
    %242 = arith.index_cast %c5_i32 : i32 to index
    %c0_98 = arith.constant 0 : index
    %c0_99 = arith.constant 0 : index
    %243 = vector.load %arg11[%242, %c0_98, %c0_99] : memref<8x8x512xbf16, #tpu.memory_space<vmem>>, vector<1x8x512xbf16>
    %244 = vector.shape_cast %243 : vector<1x8x512xbf16> to vector<8x512xbf16>
    %245 = vector.extract_strided_slice %244 {offsets = [0, 128], sizes = [8, 128], strides = [1, 1]} : vector<8x512xbf16> to vector<8x128xbf16>
    %246 = arith.extf %245 : vector<8x128xbf16> to vector<8x128xf32>
    %c0_100 = arith.constant 0 : index
    %c128_101 = arith.constant 128 : index
    %247 = vector.load %arg4[%c0_100, %c128_101] : memref<128x512xbf16, #tpu.memory_space<vmem>>, vector<128x128xbf16>
    %cst_102 = arith.constant dense<0.000000e+00> : vector<8x128xf32>
    %248 = tpu.matmul %241, %247, %cst_102 {dimension_numbers = #tpu.dot_dimension_numbers<[1], [0], [0], [1], [0, 0, 1, 1], [], []>} : vector<8x128xbf16>, vector<128x128xbf16>, vector<8x128xf32> -> vector<8x128xf32>
    %249 = arith.addf %246, %248 : vector<8x128xf32>
    %250 = arith.negf %249 : vector<8x128xf32>
    %251 = math.exp %250 : vector<8x128xf32>
    %cst_103 = arith.constant 1.000000e+00 : f32
    %252 = vector.broadcast %cst_103 : f32 to vector<8x128xf32>
    %253 = arith.addf %252, %251 : vector<8x128xf32>
    %254 = arith.divf %252, %253 : vector<8x128xf32>
    %255 = arith.mulf %254, %228 : vector<8x128xf32>
    %256 = vector.extract_strided_slice %244 {offsets = [0, 0], sizes = [8, 128], strides = [1, 1]} : vector<8x512xbf16> to vector<8x128xbf16>
    %257 = arith.extf %256 : vector<8x128xbf16> to vector<8x128xf32>
    %c0_104 = arith.constant 0 : index
    %c0_105 = arith.constant 0 : index
    %258 = vector.load %arg4[%c0_104, %c0_105] : memref<128x512xbf16, #tpu.memory_space<vmem>>, vector<128x128xbf16>
    %cst_106 = arith.constant dense<0.000000e+00> : vector<8x128xf32>
    %259 = tpu.matmul %241, %258, %cst_106 {dimension_numbers = #tpu.dot_dimension_numbers<[1], [0], [0], [1], [0, 0, 1, 1], [], []>} : vector<8x128xbf16>, vector<128x128xbf16>, vector<8x128xf32> -> vector<8x128xf32>
    %260 = arith.addf %257, %259 : vector<8x128xf32>
    %261 = arith.negf %260 : vector<8x128xf32>
    %262 = math.exp %261 : vector<8x128xf32>
    %cst_107 = arith.constant 1.000000e+00 : f32
    %263 = vector.broadcast %cst_107 : f32 to vector<8x128xf32>
    %264 = arith.addf %263, %262 : vector<8x128xf32>
    %265 = arith.divf %263, %264 : vector<8x128xf32>
    %266 = vector.extract_strided_slice %244 {offsets = [0, 256], sizes = [8, 128], strides = [1, 1]} : vector<8x512xbf16> to vector<8x128xbf16>
    %267 = arith.extf %266 : vector<8x128xbf16> to vector<8x128xf32>
    %c0_108 = arith.constant 0 : index
    %c256_109 = arith.constant 256 : index
    %268 = vector.load %arg4[%c0_108, %c256_109] : memref<128x512xbf16, #tpu.memory_space<vmem>>, vector<128x128xbf16>
    %cst_110 = arith.constant dense<0.000000e+00> : vector<8x128xf32>
    %269 = tpu.matmul %241, %268, %cst_110 {dimension_numbers = #tpu.dot_dimension_numbers<[1], [0], [0], [1], [0, 0, 1, 1], [], []>} : vector<8x128xbf16>, vector<128x128xbf16>, vector<8x128xf32> -> vector<8x128xf32>
    %270 = arith.addf %267, %269 : vector<8x128xf32>
    %271 = math.tanh %270 : vector<8x128xf32>
    %272 = arith.mulf %265, %271 : vector<8x128xf32>
    %273 = arith.addf %255, %272 : vector<8x128xf32>
    %274 = vector.extract_strided_slice %244 {offsets = [0, 384], sizes = [8, 128], strides = [1, 1]} : vector<8x512xbf16> to vector<8x128xbf16>
    %275 = arith.extf %274 : vector<8x128xbf16> to vector<8x128xf32>
    %c0_111 = arith.constant 0 : index
    %c384_112 = arith.constant 384 : index
    %276 = vector.load %arg4[%c0_111, %c384_112] : memref<128x512xbf16, #tpu.memory_space<vmem>>, vector<128x128xbf16>
    %cst_113 = arith.constant dense<0.000000e+00> : vector<8x128xf32>
    %277 = tpu.matmul %241, %276, %cst_113 {dimension_numbers = #tpu.dot_dimension_numbers<[1], [0], [0], [1], [0, 0, 1, 1], [], []>} : vector<8x128xbf16>, vector<128x128xbf16>, vector<8x128xf32> -> vector<8x128xf32>
    %278 = arith.addf %275, %277 : vector<8x128xf32>
    %279 = arith.negf %278 : vector<8x128xf32>
    %280 = math.exp %279 : vector<8x128xf32>
    %cst_114 = arith.constant 1.000000e+00 : f32
    %281 = vector.broadcast %cst_114 : f32 to vector<8x128xf32>
    %282 = arith.addf %281, %280 : vector<8x128xf32>
    %283 = arith.divf %281, %282 : vector<8x128xf32>
    %284 = math.tanh %273 : vector<8x128xf32>
    %285 = arith.mulf %283, %284 : vector<8x128xf32>
    %c6_i32 = arith.constant 6 : i32
    %286 = arith.truncf %285 : vector<8x128xf32> to vector<8x128xbf16>
    %287 = arith.index_cast %c6_i32 : i32 to index
    %c0_115 = arith.constant 0 : index
    %c0_116 = arith.constant 0 : index
    %288 = vector.load %arg11[%287, %c0_115, %c0_116] : memref<8x8x512xbf16, #tpu.memory_space<vmem>>, vector<1x8x512xbf16>
    %289 = vector.shape_cast %288 : vector<1x8x512xbf16> to vector<8x512xbf16>
    %290 = vector.extract_strided_slice %289 {offsets = [0, 128], sizes = [8, 128], strides = [1, 1]} : vector<8x512xbf16> to vector<8x128xbf16>
    %291 = arith.extf %290 : vector<8x128xbf16> to vector<8x128xf32>
    %c0_117 = arith.constant 0 : index
    %c128_118 = arith.constant 128 : index
    %292 = vector.load %arg4[%c0_117, %c128_118] : memref<128x512xbf16, #tpu.memory_space<vmem>>, vector<128x128xbf16>
    %cst_119 = arith.constant dense<0.000000e+00> : vector<8x128xf32>
    %293 = tpu.matmul %286, %292, %cst_119 {dimension_numbers = #tpu.dot_dimension_numbers<[1], [0], [0], [1], [0, 0, 1, 1], [], []>} : vector<8x128xbf16>, vector<128x128xbf16>, vector<8x128xf32> -> vector<8x128xf32>
    %294 = arith.addf %291, %293 : vector<8x128xf32>
    %295 = arith.negf %294 : vector<8x128xf32>
    %296 = math.exp %295 : vector<8x128xf32>
    %cst_120 = arith.constant 1.000000e+00 : f32
    %297 = vector.broadcast %cst_120 : f32 to vector<8x128xf32>
    %298 = arith.addf %297, %296 : vector<8x128xf32>
    %299 = arith.divf %297, %298 : vector<8x128xf32>
    %300 = arith.mulf %299, %273 : vector<8x128xf32>
    %301 = vector.extract_strided_slice %289 {offsets = [0, 0], sizes = [8, 128], strides = [1, 1]} : vector<8x512xbf16> to vector<8x128xbf16>
    %302 = arith.extf %301 : vector<8x128xbf16> to vector<8x128xf32>
    %c0_121 = arith.constant 0 : index
    %c0_122 = arith.constant 0 : index
    %303 = vector.load %arg4[%c0_121, %c0_122] : memref<128x512xbf16, #tpu.memory_space<vmem>>, vector<128x128xbf16>
    %cst_123 = arith.constant dense<0.000000e+00> : vector<8x128xf32>
    %304 = tpu.matmul %286, %303, %cst_123 {dimension_numbers = #tpu.dot_dimension_numbers<[1], [0], [0], [1], [0, 0, 1, 1], [], []>} : vector<8x128xbf16>, vector<128x128xbf16>, vector<8x128xf32> -> vector<8x128xf32>
    %305 = arith.addf %302, %304 : vector<8x128xf32>
    %306 = arith.negf %305 : vector<8x128xf32>
    %307 = math.exp %306 : vector<8x128xf32>
    %cst_124 = arith.constant 1.000000e+00 : f32
    %308 = vector.broadcast %cst_124 : f32 to vector<8x128xf32>
    %309 = arith.addf %308, %307 : vector<8x128xf32>
    %310 = arith.divf %308, %309 : vector<8x128xf32>
    %311 = vector.extract_strided_slice %289 {offsets = [0, 256], sizes = [8, 128], strides = [1, 1]} : vector<8x512xbf16> to vector<8x128xbf16>
    %312 = arith.extf %311 : vector<8x128xbf16> to vector<8x128xf32>
    %c0_125 = arith.constant 0 : index
    %c256_126 = arith.constant 256 : index
    %313 = vector.load %arg4[%c0_125, %c256_126] : memref<128x512xbf16, #tpu.memory_space<vmem>>, vector<128x128xbf16>
    %cst_127 = arith.constant dense<0.000000e+00> : vector<8x128xf32>
    %314 = tpu.matmul %286, %313, %cst_127 {dimension_numbers = #tpu.dot_dimension_numbers<[1], [0], [0], [1], [0, 0, 1, 1], [], []>} : vector<8x128xbf16>, vector<128x128xbf16>, vector<8x128xf32> -> vector<8x128xf32>
    %315 = arith.addf %312, %314 : vector<8x128xf32>
    %316 = math.tanh %315 : vector<8x128xf32>
    %317 = arith.mulf %310, %316 : vector<8x128xf32>
    %318 = arith.addf %300, %317 : vector<8x128xf32>
    %319 = vector.extract_strided_slice %289 {offsets = [0, 384], sizes = [8, 128], strides = [1, 1]} : vector<8x512xbf16> to vector<8x128xbf16>
    %320 = arith.extf %319 : vector<8x128xbf16> to vector<8x128xf32>
    %c0_128 = arith.constant 0 : index
    %c384_129 = arith.constant 384 : index
    %321 = vector.load %arg4[%c0_128, %c384_129] : memref<128x512xbf16, #tpu.memory_space<vmem>>, vector<128x128xbf16>
    %cst_130 = arith.constant dense<0.000000e+00> : vector<8x128xf32>
    %322 = tpu.matmul %286, %321, %cst_130 {dimension_numbers = #tpu.dot_dimension_numbers<[1], [0], [0], [1], [0, 0, 1, 1], [], []>} : vector<8x128xbf16>, vector<128x128xbf16>, vector<8x128xf32> -> vector<8x128xf32>
    %323 = arith.addf %320, %322 : vector<8x128xf32>
    %324 = arith.negf %323 : vector<8x128xf32>
    %325 = math.exp %324 : vector<8x128xf32>
    %cst_131 = arith.constant 1.000000e+00 : f32
    %326 = vector.broadcast %cst_131 : f32 to vector<8x128xf32>
    %327 = arith.addf %326, %325 : vector<8x128xf32>
    %328 = arith.divf %326, %327 : vector<8x128xf32>
    %329 = math.tanh %318 : vector<8x128xf32>
    %330 = arith.mulf %328, %329 : vector<8x128xf32>
    %c7_i32 = arith.constant 7 : i32
    %331 = arith.truncf %330 : vector<8x128xf32> to vector<8x128xbf16>
    %332 = arith.index_cast %c7_i32 : i32 to index
    %c0_132 = arith.constant 0 : index
    %c0_133 = arith.constant 0 : index
    %333 = vector.load %arg11[%332, %c0_132, %c0_133] : memref<8x8x512xbf16, #tpu.memory_space<vmem>>, vector<1x8x512xbf16>
    %334 = vector.shape_cast %333 : vector<1x8x512xbf16> to vector<8x512xbf16>
    %335 = vector.extract_strided_slice %334 {offsets = [0, 128], sizes = [8, 128], strides = [1, 1]} : vector<8x512xbf16> to vector<8x128xbf16>
    %336 = arith.extf %335 : vector<8x128xbf16> to vector<8x128xf32>
    %c0_134 = arith.constant 0 : index
    %c128_135 = arith.constant 128 : index
    %337 = vector.load %arg4[%c0_134, %c128_135] : memref<128x512xbf16, #tpu.memory_space<vmem>>, vector<128x128xbf16>
    %cst_136 = arith.constant dense<0.000000e+00> : vector<8x128xf32>
    %338 = tpu.matmul %331, %337, %cst_136 {dimension_numbers = #tpu.dot_dimension_numbers<[1], [0], [0], [1], [0, 0, 1, 1], [], []>} : vector<8x128xbf16>, vector<128x128xbf16>, vector<8x128xf32> -> vector<8x128xf32>
    %339 = arith.addf %336, %338 : vector<8x128xf32>
    %340 = arith.negf %339 : vector<8x128xf32>
    %341 = math.exp %340 : vector<8x128xf32>
    %cst_137 = arith.constant 1.000000e+00 : f32
    %342 = vector.broadcast %cst_137 : f32 to vector<8x128xf32>
    %343 = arith.addf %342, %341 : vector<8x128xf32>
    %344 = arith.divf %342, %343 : vector<8x128xf32>
    %345 = arith.mulf %344, %318 : vector<8x128xf32>
    %346 = vector.extract_strided_slice %334 {offsets = [0, 0], sizes = [8, 128], strides = [1, 1]} : vector<8x512xbf16> to vector<8x128xbf16>
    %347 = arith.extf %346 : vector<8x128xbf16> to vector<8x128xf32>
    %c0_138 = arith.constant 0 : index
    %c0_139 = arith.constant 0 : index
    %348 = vector.load %arg4[%c0_138, %c0_139] : memref<128x512xbf16, #tpu.memory_space<vmem>>, vector<128x128xbf16>
    %cst_140 = arith.constant dense<0.000000e+00> : vector<8x128xf32>
    %349 = tpu.matmul %331, %348, %cst_140 {dimension_numbers = #tpu.dot_dimension_numbers<[1], [0], [0], [1], [0, 0, 1, 1], [], []>} : vector<8x128xbf16>, vector<128x128xbf16>, vector<8x128xf32> -> vector<8x128xf32>
    %350 = arith.addf %347, %349 : vector<8x128xf32>
    %351 = arith.negf %350 : vector<8x128xf32>
    %352 = math.exp %351 : vector<8x128xf32>
    %cst_141 = arith.constant 1.000000e+00 : f32
    %353 = vector.broadcast %cst_141 : f32 to vector<8x128xf32>
    %354 = arith.addf %353, %352 : vector<8x128xf32>
    %355 = arith.divf %353, %354 : vector<8x128xf32>
    %356 = vector.extract_strided_slice %334 {offsets = [0, 256], sizes = [8, 128], strides = [1, 1]} : vector<8x512xbf16> to vector<8x128xbf16>
    %357 = arith.extf %356 : vector<8x128xbf16> to vector<8x128xf32>
    %c0_142 = arith.constant 0 : index
    %c256_143 = arith.constant 256 : index
    %358 = vector.load %arg4[%c0_142, %c256_143] : memref<128x512xbf16, #tpu.memory_space<vmem>>, vector<128x128xbf16>
    %cst_144 = arith.constant dense<0.000000e+00> : vector<8x128xf32>
    %359 = tpu.matmul %331, %358, %cst_144 {dimension_numbers = #tpu.dot_dimension_numbers<[1], [0], [0], [1], [0, 0, 1, 1], [], []>} : vector<8x128xbf16>, vector<128x128xbf16>, vector<8x128xf32> -> vector<8x128xf32>
    %360 = arith.addf %357, %359 : vector<8x128xf32>
    %361 = math.tanh %360 : vector<8x128xf32>
    %362 = arith.mulf %355, %361 : vector<8x128xf32>
    %363 = arith.addf %345, %362 : vector<8x128xf32>
    %364 = vector.extract_strided_slice %334 {offsets = [0, 384], sizes = [8, 128], strides = [1, 1]} : vector<8x512xbf16> to vector<8x128xbf16>
    %365 = arith.extf %364 : vector<8x128xbf16> to vector<8x128xf32>
    %c0_145 = arith.constant 0 : index
    %c384_146 = arith.constant 384 : index
    %366 = vector.load %arg4[%c0_145, %c384_146] : memref<128x512xbf16, #tpu.memory_space<vmem>>, vector<128x128xbf16>
    %cst_147 = arith.constant dense<0.000000e+00> : vector<8x128xf32>
    %367 = tpu.matmul %331, %366, %cst_147 {dimension_numbers = #tpu.dot_dimension_numbers<[1], [0], [0], [1], [0, 0, 1, 1], [], []>} : vector<8x128xbf16>, vector<128x128xbf16>, vector<8x128xf32> -> vector<8x128xf32>
    %368 = arith.addf %365, %367 : vector<8x128xf32>
    %369 = arith.negf %368 : vector<8x128xf32>
    %370 = math.exp %369 : vector<8x128xf32>
    %cst_148 = arith.constant 1.000000e+00 : f32
    %371 = vector.broadcast %cst_148 : f32 to vector<8x128xf32>
    %372 = arith.addf %371, %370 : vector<8x128xf32>
    %373 = arith.divf %371, %372 : vector<8x128xf32>
    %374 = math.tanh %363 : vector<8x128xf32>
    %375 = arith.mulf %373, %374 : vector<8x128xf32>
    %c8_i32 = arith.constant 8 : i32
    %c0_149 = arith.constant 0 : index
    %c0_150 = arith.constant 0 : index
    %376 = vector.load %arg9[%c0_149, %c0_150] : memref<8x128xf32, #tpu.memory_space<vmem>>, vector<8x128xf32>
    tpu.vector_store %arg9[%c0_149, %c0_150], %375 {strides = array<i32>} : memref<8x128xf32, #tpu.memory_space<vmem>>, vector<8x128xf32>,
    %c0_151 = arith.constant 0 : index
    %c0_152 = arith.constant 0 : index
    %377 = vector.load %arg10[%c0_151, %c0_152] : memref<8x128xf32, #tpu.memory_space<vmem>>, vector<8x128xf32>
    tpu.vector_store %arg10[%c0_151, %c0_152], %363 {strides = array<i32>} : memref<8x128xf32, #tpu.memory_space<vmem>>, vector<8x128xf32>,
    %c0_i32_153 = arith.constant 0 : i32
    %378 = arith.cmpi eq, %arg1, %c0_i32_153 : i32
    %379 = arith.extui %378 : i1 to i32
    %c0_i32_154 = arith.constant 0 : i32
    %380 = arith.cmpi ne, %379, %c0_i32_154 : i32
    scf.if %380 {
      %c0_155 = arith.constant 0 : index
      %c0_156 = arith.constant 0 : index
      %381 = vector.load %arg6[%c0_155, %c0_156] : memref<128x128xf32, #tpu.memory_space<vmem>>, vector<128x128xf32>
      %cst_157 = arith.constant dense<0.000000e+00> : vector<8x128xf32>
      %382 = tpu.matmul %375, %381, %cst_157 {dimension_numbers = #tpu.dot_dimension_numbers<[1], [0], [0], [1], [0, 0, 1, 1], [], []>} : vector<8x128xf32>, vector<128x128xf32>, vector<8x128xf32> -> vector<8x128xf32>
      %c0_158 = arith.constant 0 : index
      %c0_159 = arith.constant 0 : index
      %383 = vector.load %arg7[%c0_158, %c0_159] : memref<1x128xf32, #tpu.memory_space<vmem>>, vector<1x128xf32>
      %384 = vector.broadcast %383 : vector<1x128xf32> to vector<8x128xf32>
      %385 = arith.addf %382, %384 : vector<8x128xf32>
      %cst_160 = arith.constant dense<0xFF800000> : vector<8xf32>
      %386 = vector.multi_reduction <maximumf>, %385, %cst_160 [1] : vector<8x128xf32> to vector<8xf32>
      %387 = vector.shape_cast %386 : vector<8xf32> to vector<8x1xf32>
      %388 = vector.broadcast %387 : vector<8x1xf32> to vector<8x128xf32>
      %389 = arith.subf %385, %388 : vector<8x128xf32>
      %390 = math.exp %389 : vector<8x128xf32>
      %cst_161 = arith.constant dense<0.000000e+00> : vector<8xf32>
      %391 = vector.multi_reduction <add>, %390, %cst_161 [1] : vector<8x128xf32> to vector<8xf32>
      %392 = vector.shape_cast %391 : vector<8xf32> to vector<8x1xf32>
      %393 = math.log %392 : vector<8x1xf32>
      %394 = vector.broadcast %393 : vector<8x1xf32> to vector<8x128xf32>
      %395 = arith.subf %389, %394 : vector<8x128xf32>
      %c0_162 = arith.constant 0 : index
      %c0_163 = arith.constant 0 : index
      %396 = vector.load %arg8[%c0_162, %c0_163] : memref<8x128xf32, #tpu.memory_space<vmem>>, vector<8x128xf32>
      tpu.vector_store %arg8[%c0_162, %c0_163], %395 {strides = array<i32>} : memref<8x128xf32, #tpu.memory_space<vmem>>, vector<8x128xf32>,
    } else {
    }
    return
  }
  func.func @transform_0(%arg0: i32, %arg1: i32) -> (i32, i32, i32, i32) {
    %c0_i32 = arith.constant 0 : i32
    %c0_i32_0 = arith.constant 0 : i32
    %c0_i32_1 = arith.constant 0 : i32
    return %arg0, %arg1, %c0_i32, %c0_i32_0 : i32, i32, i32, i32
  }
  func.func @transform_1(%arg0: i32, %arg1: i32) -> (i32, i32) {
    %c0_i32 = arith.constant 0 : i32
    %c0_i32_0 = arith.constant 0 : i32
    %c0_i32_1 = arith.constant 0 : i32
    return %c0_i32, %c0_i32_0 : i32, i32
  }
  func.func @transform_2(%arg0: i32, %arg1: i32) -> (i32, i32) {
    %c0_i32 = arith.constant 0 : i32
    %c0_i32_0 = arith.constant 0 : i32
    %c0_i32_1 = arith.constant 0 : i32
    return %c0_i32, %c0_i32_0 : i32, i32
  }
  func.func @transform_3(%arg0: i32, %arg1: i32) -> (i32, i32) {
    %c0_i32 = arith.constant 0 : i32
    %c0_i32_0 = arith.constant 0 : i32
    %c0_i32_1 = arith.constant 0 : i32
    return %c0_i32, %c0_i32_0 : i32, i32
  }
  func.func @transform_4(%arg0: i32, %arg1: i32) -> (i32, i32) {
    %c0_i32 = arith.constant 0 : i32
    %c0_i32_0 = arith.constant 0 : i32
    %c0_i32_1 = arith.constant 0 : i32
    return %c0_i32, %c0_i32_0 : i32, i32
  }
  func.func @transform_5(%arg0: i32, %arg1: i32) -> (i32, i32) {
    %c0_i32 = arith.constant 0 : i32
    %c0_i32_0 = arith.constant 0 : i32
    %c0_i32_1 = arith.constant 0 : i32
    return %c0_i32, %c0_i32_0 : i32, i32
  }
  func.func @transform_6(%arg0: i32, %arg1: i32) -> (i32, i32) {
    %c0_i32 = arith.constant 0 : i32
    %c0_i32_0 = arith.constant 0 : i32
    return %arg0, %c0_i32 : i32, i32
  }
}

</mosaic_0001>

<bundles_post_ra>
// kernel: _forward_impl.1
= control target key start
LH: loop header
LB: loop body
LE: loop exit
PB: predicated region body
PF: predicated region fallthrough
CT: control target
= control target key end

     0   :  { %11 = vsyncpa [#allocation6], 0  ;;  %s4756_s0 = inlined_call_operand.vmem [shape: bf16[1,8,8,16], index: 0, kind: input, shape index: {}]   ;;  %s4757_s1 = inlined_call_operand.vmem [shape: bf16[16,512], index: 1, kind: input, shape index: {}]   ;;  %s4758_s2 = inlined_call_operand.hbm [shape: bf16[128,512], index: 2, kind: input, shape index: {}]   ;;  %s4759_s3 = inlined_call_operand.vmem [shape: f32[1,512], index: 3, kind: input, shape index: {}]   ;;  %s4760_s4 = inlined_call_operand.hbm [shape: f32[128,128], index: 4, kind: input, shape index: {}]   ;;  %s4761_s5 = inlined_call_operand.vmem [shape: f32[1,128], index: 5, kind: input, shape index: {}]   ;;  %s4762_s6 = inlined_call_operand.vmem [shape: f32[8,128], index: 6, kind: output, shape index: {}]  }
   0x1   :  { %12 = vsyncpa [#allocation8], 0  ;;  %s3796_s21 = smov [#allocation5]   ;;  %s3748_s25 = scalar_lea.hbm %s4758_s2, 4096 }
   0x2   :  { %s22_s22 = sshll.u32 %s3796_s21, 4  ;;  %p3749_p0 = scmp.ne.s32.totalorder %s4758_s2, %s3748_s25  ;;  %s23_s22 = int_to_ptr.vmem [resolvable:$true] %s22_s22 }
   0x3   :  { %p3752_p1 = scmp.lt.u32.totalorder %s3748_s25, %s4758_s2 }
   0x5   :  { %p3754_p2 = pnand %p3752_p1, %p3749_p0 }
   0x7   :  { %3757 = shalt.err (!%p3754_p2)
}
   0x8   :  { %s3758_s30 = scalar_lea.vmem %s23_s22, 4096  ;;  %p3763_p4 = scmp.lt.s32.totalorder %s23_s22, %s23_s22 }
   0x9   :  { %p3759_p3 = scmp.ne.s32.totalorder %s23_s22, %s3758_s30  ;;  %p3764_p5 = scmp.lt.s32.totalorder %s3758_s30, %s3758_s30 }
   0xb   :  { %p3765_p6 = por %p3764_p5, %p3763_p4 }
   0xd   :  { %p3766_p7 = pnand %p3765_p6, %p3759_p3 }
   0xf   :  { %3769 = shalt.err (!%p3766_p7)
}
  0x10   :  { %s3797_s7 = smov 256   ;;  %s3798_s8 = smov 16  }
  0x11   :  { %28 = dma.hbm_to_vmem [thread:$0]  %s4758_s2, 4096, %s23_s22, [#allocation6], %s3797_s7, %s3797_s7, %s3798_s8  }
  0x12   :  { %s3799_s11 = smov [#allocation7]   ;;  %s3770_s15 = scalar_lea.hbm %s4760_s4, 2048 }
  0x13   :  { %s36_s12 = sshll.u32 %s3799_s11, 4  ;;  %p3771_p8 = scmp.ne.s32.totalorder %s4760_s4, %s3770_s15  ;;  %s37_s12 = int_to_ptr.vmem [resolvable:$true] %s36_s12 }
  0x14   :  { %p3774_p9 = scmp.lt.u32.totalorder %s3770_s15, %s4760_s4 }
  0x16   :  { %p3776_p10 = pnand %p3774_p9, %p3771_p8 }
  0x18   :  { %3779 = shalt.err (!%p3776_p10)
}
  0x19   :  { %s3780_s20 = scalar_lea.vmem %s37_s12, 2048  ;;  %p3785_p12 = scmp.lt.s32.totalorder %s37_s12, %s37_s12 }
  0x1a   :  { %p3781_p11 = scmp.ne.s32.totalorder %s37_s12, %s3780_s20  ;;  %p3786_p13 = scmp.lt.s32.totalorder %s3780_s20, %s3780_s20 }
  0x1c   :  { %p3787_p0 = por %p3786_p13, %p3785_p12 }
  0x1e   :  { %p3788_p1 = pnand %p3787_p0, %p3781_p11 }
  0x20   :  { %3791 = shalt.err (!%p3788_p1)
}
  0x21   :  { %s3800_s2 = smov 128   ;;  %s3801_s21 = smov 8  }
  0x22   :  { %42 = dma.hbm_to_vmem [thread:$0]  %s4760_s4, 2048, %s37_s12, [#allocation8], %s3800_s2, %s3800_s2, %s3801_s21  }
  0x23   :  { %3792 = dma.done.wait [#allocation6], 4096  }
  0x24   :  { %3793 = vsyncadd [#allocation6], 4294963200 }
  0x25   :  { %3794 = dma.done.wait [#allocation8], 2048  }
  0x26   :  { %3795 = vsyncadd [#allocation8], 4294965248  ;;  %v3802_v0 = vmov 0   ;;  %v3542_v1 = vld [vmem:[%s4757_s1 + $0x4] ss:$16 sps:$4 sm:$0xff]   ;;  %vm132_vm0 = vcmask 130048   ;;  %v72_v43 = vlaneseq }
  0x27   :  { %177 = vmatprep.mubr.bf16.mxu0 %v3802_v0  ;;  %250 = vmatprep.mubr.bf16.mxu1 %v3802_v0  ;;  %v3544_v2 = vld [vmem:[%s4757_s1 + $0xc] ss:$16 sps:$4 sm:$0xff]   ;;  %v3546_v3 = vld [vmem:[%s4757_s1] ss:$16 sps:$4 sm:$0xff]   ;;  %v3547_v4 = vld [vmem:[%s4757_s1 + $0x8] ss:$16 sps:$4 sm:$0xff]  }
  0x28   :  { %145 = vmatprep.subr.bf16.mxu0 %v3542_v1  ;;  %218 = vmatprep.subr.bf16.mxu1 %v3544_v2  ;;  %v3548_v5 = vld [vmem:[%s4756_s0] sm:$0xff]   ;;  %v4765_v7 = vmov 0.0   ;;  %v3553_v11 = vld [vmem:[%s4756_s0 + $0x8] sm:$0xff]   ;;  %v3558_v16 = vld [vmem:[%s4756_s0 + $0x10] sm:$0xff]   ;;  %vm3804_vm1 = vmmov 0   ;;  %v4763_v28 = vmov 0.0|0.0  }
  0x29   :  { %146 = vmatpush1.bf16.msra.mxu0 %v3546_v3  ;;  %219 = vmatpush1.bf16.msra.mxu1 %v3547_v4  ;;  %v3880_v6 = vld [vmem:[#allocation5 + $0x4] ss:$16 sps:$4 sm:$0xff]   ;;  %v3884_v8 = vld [vmem:[#allocation5] ss:$16 sps:$4 sm:$0xff]   ;;  %v3563_v21 = vld [vmem:[%s4756_s0 + $0x18] sm:$0xff]   ;;  %v73_v44 = vshrl.u32 %v72_v43, 7 }
  0x2a   :  { %2833 = vmatprep.subr.bf16.mxu0 %v4765_v7  ;;  %2853 = vmatprep.subr.bf16.mxu1 %v4765_v7  ;;  %v3888_v9 = vld [vmem:[#allocation5 + $0x24] ss:$16 sps:$4 sm:$0xff]   ;;  %v3892_v10 = vld [vmem:[#allocation5 + $0x20] ss:$16 sps:$4 sm:$0xff]   ;;  %v3963_v26 = vld [vmem:[#allocation5 + $0x8] ss:$16 sps:$4 sm:$0xff]  }
  0x2b   :  { %v3899_v12 = vld [vmem:[#allocation5 + $0x44] ss:$16 sps:$4 sm:$0xff]   ;;  %v3903_v13 = vld [vmem:[#allocation5 + $0x40] ss:$16 sps:$4 sm:$0xff]   ;;  %v3967_v27 = vld [vmem:[#allocation5 + $0xc] ss:$16 sps:$4 sm:$0xff]  }
  0x2c   :  { %2431 = vmatmul.mubr.msk.bf16.vlgmr.msra.gmra.mrb[0].mxu0 %vm132_vm0, %v3548_v5  ;;  %2435 = vmatmul.mubr.msk.bf16.vlgmr.msra.gmra.mrb[0].mxu1 %vm132_vm0, %v3548_v5  ;;  %v3909_v14 = vld [vmem:[#allocation5 + $0x64] ss:$16 sps:$4 sm:$0xff]   ;;  %v3913_v15 = vld [vmem:[#allocation5 + $0x60] ss:$16 sps:$4 sm:$0xff]   ;;  %v3975_v29 = vld [vmem:[#allocation5 + $0x28] ss:$16 sps:$4 sm:$0xff]  }
  0x2d   :  { %2834 = vmatpush3.bf16.msra.mxu0 %v3880_v6  ;;  %2854 = vmatpush3.bf16.msra.mxu1 %v3884_v8  ;;  %v3920_v17 = vld [vmem:[#allocation5 + $0x84] ss:$16 sps:$4 sm:$0xff]   ;;  %v3924_v18 = vld [vmem:[#allocation5 + $0x80] ss:$16 sps:$4 sm:$0xff]   ;;  %v3977_v30 = vld [vmem:[#allocation5 + $0x2c] ss:$16 sps:$4 sm:$0xff]  }
  0x2e   :  { %2835 = vmatprep.subr.bf16.mxu0 %v4765_v7  ;;  %2855 = vmatprep.subr.bf16.mxu1 %v4765_v7  ;;  %v3930_v19 = vld [vmem:[#allocation5 + $0xa4] ss:$16 sps:$4 sm:$0xff]   ;;  %v3934_v20 = vld [vmem:[#allocation5 + $0xa0] ss:$16 sps:$4 sm:$0xff]   ;;  %v3987_v31 = vld [vmem:[#allocation5 + $0x48] ss:$16 sps:$4 sm:$0xff]  }
  0x2f   :  { %187 = vmatprep.mubr.bf16.mxu0 %v3802_v0  ;;  %260 = vmatprep.mubr.bf16.mxu1 %v3802_v0  ;;  %v3941_v22 = vld [vmem:[#allocation5 + $0xc4] ss:$16 sps:$4 sm:$0xff]   ;;  %v3945_v23 = vld [vmem:[#allocation5 + $0xc0] ss:$16 sps:$4 sm:$0xff]   ;;  %v3989_v32 = vld [vmem:[#allocation5 + $0x4c] ss:$16 sps:$4 sm:$0xff]  }
  0x30   :  { %v3951_v24 = vld [vmem:[#allocation5 + $0xe4] ss:$16 sps:$4 sm:$0xff]   ;;  %v3955_v25 = vld [vmem:[#allocation5 + $0xe0] ss:$16 sps:$4 sm:$0xff]   ;;  %v3995_v33 = vld [vmem:[#allocation5 + $0x68] ss:$16 sps:$4 sm:$0xff]  }
  0x31   :  { %2836 = vmatpush3.bf16.msra.mxu0 %v3888_v9  ;;  %2856 = vmatpush3.bf16.msra.mxu1 %v3892_v10  ;;  %v3997_v34 = vld [vmem:[#allocation5 + $0x6c] ss:$16 sps:$4 sm:$0xff]   ;;  %v4003_v35 = vld [vmem:[#allocation5 + $0x88] ss:$16 sps:$4 sm:$0xff]   ;;  %v74_v45 = vsub.s32 0, %v73_v44  ;;  %v82_v46 = vsub.s32 2, %v73_v44 }
  0x32   :  { %2837 = vmatprep.subr.bf16.mxu0 %v4765_v7  ;;  %2857 = vmatprep.subr.bf16.mxu1 %v4765_v7  ;;  %v4005_v36 = vld [vmem:[#allocation5 + $0x8c] ss:$16 sps:$4 sm:$0xff]   ;;  %v4011_v37 = vld [vmem:[#allocation5 + $0xa8] ss:$16 sps:$4 sm:$0xff]   ;;  %v70_v47 = vld [vmem:[%s4759_s3] sm:$0xf] }
  0x33   :  { %v4013_v38 = vld [vmem:[#allocation5 + $0xac] ss:$16 sps:$4 sm:$0xff]   ;;  %v4019_v39 = vld [vmem:[#allocation5 + $0xc8] ss:$16 sps:$4 sm:$0xff]   ;;  %v78_v48 = vsub.s32 1, %v73_v44  ;;  %v86_v49 = vsub.s32 3, %v73_v44  ;;  %v4078_v50 = vrot.slane %v70_v47, %v74_v45  ;;  %v4080_v51 = vrot.slane %v70_v47, %v82_v46 }
  0x34   :  { %2432 = vmatmul.mubr.msk.bf16.gmra.mrb[4].mxu0 %vm132_vm0, %v3553_v11  ;;  %2436 = vmatmul.mubr.msk.bf16.gmra.mrb[4].mxu1 %vm132_vm0, %v3553_v11  ;;  %v4021_v40 = vld [vmem:[#allocation5 + $0xcc] ss:$16 sps:$4 sm:$0xff]   ;;  %v4027_v41 = vld [vmem:[#allocation5 + $0xe8] ss:$16 sps:$4 sm:$0xff]  }
  0x35   :  { %2838 = vmatpush3.bf16.msra.mxu0 %v3899_v12  ;;  %2858 = vmatpush3.bf16.msra.mxu1 %v3903_v13  ;;  %v4029_v42 = vld [vmem:[#allocation5 + $0xec] ss:$16 sps:$4 sm:$0xff]   ;;  %v4082_v52 = vrot.slane %v70_v47, %v78_v48  ;;  %v4084_v53 = vrot.slane %v70_v47, %v86_v49 }
  0x36   :  { %2839 = vmatprep.subr.bf16.mxu0 %v4765_v7  ;;  %2859 = vmatprep.subr.bf16.mxu1 %v4765_v7 }
  0x37   :  { %197 = vmatprep.mubr.bf16.mxu0 %v3802_v0  ;;  %270 = vmatprep.mubr.bf16.mxu1 %v3802_v0 }
  0x39   :  { %2840 = vmatpush3.bf16.msra.mxu0 %v3909_v14  ;;  %2860 = vmatpush3.bf16.msra.mxu1 %v3913_v15 }
  0x3a   :  { %2841 = vmatprep.subr.bf16.mxu0 %v4765_v7  ;;  %2861 = vmatprep.subr.bf16.mxu1 %v4765_v7 }
  0x3c   :  { %2433 = vmatmul.mubr.msk.bf16.gmra.mrb[8].mxu0 %vm132_vm0, %v3558_v16  ;;  %2437 = vmatmul.mubr.msk.bf16.gmra.mrb[8].mxu1 %vm132_vm0, %v3558_v16 }
  0x3d   :  { %2842 = vmatpush3.bf16.msra.mxu0 %v3920_v17  ;;  %2862 = vmatpush3.bf16.msra.mxu1 %v3924_v18 }
  0x3e   :  { %2843 = vmatprep.subr.bf16.mxu0 %v4765_v7  ;;  %2863 = vmatprep.subr.bf16.mxu1 %v4765_v7 }
  0x3f   :  { %207 = vmatprep.mubr.bf16.mxu0 %v3802_v0  ;;  %280 = vmatprep.mubr.bf16.mxu1 %v3802_v0 }
  0x41   :  { %2844 = vmatpush3.bf16.msra.mxu0 %v3930_v19  ;;  %2864 = vmatpush3.bf16.msra.mxu1 %v3934_v20 }
  0x42   :  { %2845 = vmatprep.subr.bf16.mxu0 %v4765_v7  ;;  %2865 = vmatprep.subr.bf16.mxu1 %v4765_v7 }
  0x44   :  { %2434 = vmatmul.mubr.msk.bf16.gmra.mrb[12].mxu0 %vm132_vm0, %v3563_v21  ;;  %2438 = vmatmul.mubr.msk.bf16.gmra.mrb[12].mxu1 %vm132_vm0, %v3563_v21 }
  0x45   :  { %2846 = vmatpush3.bf16.msra.mxu0 %v3941_v22  ;;  %2866 = vmatpush3.bf16.msra.mxu1 %v3945_v23 }
  0x46   :  { %2847 = vmatprep.subr.bf16.mxu0 %v4765_v7  ;;  %2867 = vmatprep.subr.bf16.mxu1 %v4765_v7 }
  0x47   :  { %2849 = vmatprep.mubr.msk.bf16.mxu0 %vm3804_vm1, %v4765_v7  ;;  %2869 = vmatprep.mubr.msk.bf16.mxu1 %vm3804_vm1, %v4765_v7 }
  0x49   :  { %2848 = vmatpush3.bf16.msra.mxu0 %v3951_v24  ;;  %2868 = vmatpush3.bf16.msra.mxu1 %v3955_v25 }
  0x4a   :  { %2873 = vmatprep.subr.bf16.mxu0 %v4765_v7  ;;  %2893 = vmatprep.subr.bf16.mxu1 %v4765_v7 }
  0x4c   :  { %2850 = vmatmul.mubr.bf16.vlgmr.msra.gmra.mrb[16].mxu0 %v4763_v28  ;;  %2870 = vmatmul.mubr.bf16.vlgmr.msra.gmra.mrb[16].mxu1 %v4763_v28 }
  0x4d   :  { %2874 = vmatpush3.bf16.msra.mxu0 %v3963_v26  ;;  %2894 = vmatpush3.bf16.msra.mxu1 %v3967_v27 }
  0x4e   :  { %2875 = vmatprep.subr.bf16.mxu0 %v4765_v7  ;;  %2895 = vmatprep.subr.bf16.mxu1 %v4765_v7 }
  0x4f   :  { %2889 = vmatprep.mubr.msk.bf16.mxu0 %vm3804_vm1, %v4765_v7  ;;  %2909 = vmatprep.mubr.msk.bf16.mxu1 %vm3804_vm1, %v4765_v7 }
  0x51   :  { %2876 = vmatpush3.bf16.msra.mxu0 %v3975_v29  ;;  %2896 = vmatpush3.bf16.msra.mxu1 %v3977_v30 }
  0x52   :  { %2877 = vmatprep.subr.bf16.mxu0 %v4765_v7  ;;  %2897 = vmatprep.subr.bf16.mxu1 %v4765_v7 }
  0x55   :  { %2878 = vmatpush3.bf16.msra.mxu0 %v3987_v31  ;;  %2898 = vmatpush3.bf16.msra.mxu1 %v3989_v32 }
  0x56   :  { %2879 = vmatprep.subr.bf16.mxu0 %v4765_v7  ;;  %2899 = vmatprep.subr.bf16.mxu1 %v4765_v7 }
  0x59   :  { %2880 = vmatpush3.bf16.msra.mxu0 %v3995_v33  ;;  %2900 = vmatpush3.bf16.msra.mxu1 %v3997_v34 }
  0x5a   :  { %2881 = vmatprep.subr.bf16.mxu0 %v4765_v7  ;;  %2901 = vmatprep.subr.bf16.mxu1 %v4765_v7 }
  0x5d   :  { %2882 = vmatpush3.bf16.msra.mxu0 %v4003_v35  ;;  %2902 = vmatpush3.bf16.msra.mxu1 %v4005_v36 }
  0x5e   :  { %2883 = vmatprep.subr.bf16.mxu0 %v4765_v7  ;;  %2903 = vmatprep.subr.bf16.mxu1 %v4765_v7 }
  0x61   :  { %2884 = vmatpush3.bf16.msra.mxu0 %v4011_v37  ;;  %2904 = vmatpush3.bf16.msra.mxu1 %v4013_v38 }
  0x62   :  { %2885 = vmatprep.subr.bf16.mxu0 %v4765_v7  ;;  %2905 = vmatprep.subr.bf16.mxu1 %v4765_v7 }
  0x65   :  { %2886 = vmatpush3.bf16.msra.mxu0 %v4019_v39  ;;  %2906 = vmatpush3.bf16.msra.mxu1 %v4021_v40 }
  0x66   :  { %2887 = vmatprep.subr.bf16.mxu0 %v4765_v7  ;;  %2907 = vmatprep.subr.bf16.mxu1 %v4765_v7 }
  0x69   :  { %2888 = vmatpush3.bf16.msra.mxu0 %v4027_v41  ;;  %2908 = vmatpush3.bf16.msra.mxu1 %v4029_v42 }
  0x6a   :  { %2913 = vmatprep.subr.bf16.mxu0 %v4765_v7  ;;  %2933 = vmatprep.subr.bf16.mxu1 %v4765_v7 }
  0x6c   :  { %2890 = vmatmul.mubr.bf16.vlgmr.msra.gmra.mrb[20].mxu0 %v4763_v28  ;;  %2910 = vmatmul.mubr.bf16.vlgmr.msra.gmra.mrb[20].mxu1 %v4763_v28 }
  0x6d   :  { %2914 = vmatpush3.bf16.msra.mxu0 %v3880_v6  ;;  %2934 = vmatpush3.bf16.msra.mxu1 %v3884_v8 }
  0x6e   :  { %2915 = vmatprep.subr.bf16.mxu0 %v4765_v7  ;;  %2935 = vmatprep.subr.bf16.mxu1 %v4765_v7 }
  0x6f   :  { %2929 = vmatprep.mubr.msk.bf16.mxu0 %vm3804_vm1, %v4765_v7  ;;  %2949 = vmatprep.mubr.msk.bf16.mxu1 %vm3804_vm1, %v4765_v7 }
  0x71   :  { %2916 = vmatpush3.bf16.msra.mxu0 %v3888_v9  ;;  %2936 = vmatpush3.bf16.msra.mxu1 %v3892_v10 }
  0x72   :  { %2917 = vmatprep.subr.bf16.mxu0 %v4765_v7  ;;  %2937 = vmatprep.subr.bf16.mxu1 %v4765_v7 }
  0x75   :  { %2918 = vmatpush3.bf16.msra.mxu0 %v3899_v12  ;;  %2938 = vmatpush3.bf16.msra.mxu1 %v3903_v13 }
  0x76   :  { %2919 = vmatprep.subr.bf16.mxu0 %v4765_v7  ;;  %2939 = vmatprep.subr.bf16.mxu1 %v4765_v7 }
  0x79   :  { %2920 = vmatpush3.bf16.msra.mxu0 %v3909_v14  ;;  %2940 = vmatpush3.bf16.msra.mxu1 %v3913_v15 }
  0x7a   :  { %2921 = vmatprep.subr.bf16.mxu0 %v4765_v7  ;;  %2941 = vmatprep.subr.bf16.mxu1 %v4765_v7 }
  0x7d   :  { %2922 = vmatpush3.bf16.msra.mxu0 %v3920_v17  ;;  %2942 = vmatpush3.bf16.msra.mxu1 %v3924_v18 }
  0x7e   :  { %2923 = vmatprep.subr.bf16.mxu0 %v4765_v7  ;;  %2943 = vmatprep.subr.bf16.mxu1 %v4765_v7 }
  0x81   :  { %2924 = vmatpush3.bf16.msra.mxu0 %v3930_v19  ;;  %2944 = vmatpush3.bf16.msra.mxu1 %v3934_v20 }
  0x82   :  { %2925 = vmatprep.subr.bf16.mxu0 %v4765_v7  ;;  %2945 = vmatprep.subr.bf16.mxu1 %v4765_v7 }
  0x85   :  { %2926 = vmatpush3.bf16.msra.mxu0 %v3941_v22  ;;  %2946 = vmatpush3.bf16.msra.mxu1 %v3945_v23 }
  0x86   :  { %2927 = vmatprep.subr.bf16.mxu0 %v4765_v7  ;;  %2947 = vmatprep.subr.bf16.mxu1 %v4765_v7 }
  0x89   :  { %2928 = vmatpush3.bf16.msra.mxu0 %v3951_v24  ;;  %2948 = vmatpush3.bf16.msra.mxu1 %v3955_v25 }
  0x8a   :  { %2953 = vmatprep.subr.bf16.mxu0 %v4765_v7  ;;  %2973 = vmatprep.subr.bf16.mxu1 %v4765_v7 }
  0xff   :  { %v179_v54 = vpop.f32.mrb[0].mxu0  ;;  %v252_v55 = vpop.f32.mrb[0].mxu1 }
 0x100   :  { %v180_v56 = vadd.f32 %v179_v54, %v4078_v50  ;;  %v253_v57 = vadd.f32 %v252_v55, %v4080_v51  ;;  %v181_v58 = vpop.f32.mrb[1].mxu0  ;;  %v254_v59 = vpop.f32.mrb[1].mxu1 }
 0x101   :  { %v182_v60 = vadd.f32 %v181_v58, %v4082_v52  ;;  %v255_v61 = vadd.f32 %v254_v59, %v4084_v53  ;;  %v183_v62 = vpop.f32.mrb[2].mxu0  ;;  %v256_v63 = vpop.f32.mrb[2].mxu1 }
 0x102   :  { %v184_v0 = vadd.f32 %v183_v62, %v4078_v50  ;;  %v257_v1 = vadd.f32 %v256_v63, %v4080_v51  ;;  %v185_v2 = vpop.f32.mrb[3].mxu0  ;;  %v258_v3 = vpop.f32.mrb[3].mxu1 }
 0x103   :  { %v4092_v4 = vpack.c.bf16 %v182_v60, %v180_v56  ;;  %v4094_v5 = vpack.c.bf16 %v255_v61, %v253_v57  ;;  %v186_v11 = vadd.f32 %v185_v2, %v4082_v52  ;;  %v259_v16 = vadd.f32 %v258_v3, %v4084_v53 }
 0x105   :  { %v4098_v21 = vpack.c.bf16 %v186_v11, %v184_v0  ;;  %v4100_v43 = vpack.c.bf16 %v259_v16, %v257_v1 }
 0x107   :  { %v189_v44 = vpop.f32.mrb[4].mxu0  ;;  %v262_v45 = vpop.f32.mrb[4].mxu1 }
 0x108   :  { %v190_v46 = vadd.f32 %v189_v44, %v4078_v50  ;;  %v263_v47 = vadd.f32 %v262_v45, %v4080_v51  ;;  %v191_v48 = vpop.f32.mrb[5].mxu0  ;;  %v264_v49 = vpop.f32.mrb[5].mxu1 }
 0x109   :  { %v192_v54 = vadd.f32 %v191_v48, %v4082_v52  ;;  %v265_v55 = vadd.f32 %v264_v49, %v4084_v53  ;;  %v193_v56 = vpop.f32.mrb[6].mxu0  ;;  %v266_v57 = vpop.f32.mrb[6].mxu1 }
 0x10a   :  { %v194_v58 = vadd.f32 %v193_v56, %v4078_v50  ;;  %v267_v59 = vadd.f32 %v266_v57, %v4080_v51  ;;  %v195_v60 = vpop.f32.mrb[7].mxu0  ;;  %v268_v61 = vpop.f32.mrb[7].mxu1 }
 0x10b   :  { %v4108_v62 = vpack.c.bf16 %v192_v54, %v190_v46  ;;  %v4110_v63 = vpack.c.bf16 %v265_v55, %v263_v47  ;;  %v196_v0 = vadd.f32 %v195_v60, %v4082_v52  ;;  %v269_v1 = vadd.f32 %v268_v61, %v4084_v53 }
 0x10d   :  { %v4114_v2 = vpack.c.bf16 %v196_v0, %v194_v58  ;;  %v4116_v3 = vpack.c.bf16 %v269_v1, %v267_v59 }
 0x10f   :  { %v199_v11 = vpop.f32.mrb[8].mxu0  ;;  %v272_v16 = vpop.f32.mrb[8].mxu1 }
 0x110   :  { %v200_v44 = vadd.f32 %v199_v11, %v4078_v50  ;;  %v273_v45 = vadd.f32 %v272_v16, %v4080_v51  ;;  %v201_v48 = vpop.f32.mrb[9].mxu0  ;;  %v274_v49 = vpop.f32.mrb[9].mxu1 }
 0x111   :  { %v202_v46 = vadd.f32 %v201_v48, %v4082_v52  ;;  %v275_v47 = vadd.f32 %v274_v49, %v4084_v53  ;;  %v203_v54 = vpop.f32.mrb[10].mxu0  ;;  %v276_v55 = vpop.f32.mrb[10].mxu1 }
 0x112   :  { %v204_v56 = vadd.f32 %v203_v54, %v4078_v50  ;;  %v277_v57 = vadd.f32 %v276_v55, %v4080_v51  ;;  %v205_v58 = vpop.f32.mrb[11].mxu0  ;;  %v278_v59 = vpop.f32.mrb[11].mxu1 }
 0x113   :  { %v4124_v60 = vpack.c.bf16 %v202_v46, %v200_v44  ;;  %v4126_v61 = vpack.c.bf16 %v275_v47, %v273_v45  ;;  %v206_v0 = vadd.f32 %v205_v58, %v4082_v52  ;;  %v279_v1 = vadd.f32 %v278_v59, %v4084_v53 }
 0x115   :  { %4772 = vst [vmem:[#allocation11_spill] sm:$0xff] %v4124_v60  ;;  %4773 = vst [vmem:[#allocation12_spill] sm:$0xff] %v4126_v61  ;;  %v4130_v11 = vpack.c.bf16 %v206_v0, %v204_v56  ;;  %v4132_v16 = vpack.c.bf16 %v279_v1, %v277_v57  ;;  %v441_v0 = vrot.slane %v4092_v4, 4 }
 0x117   :  { %4774 = vst [vmem:[#allocation13_spill] sm:$0xff] %v4130_v11  ;;  %4775 = vst [vmem:[#allocation14_spill] sm:$0xff] %v4132_v16  ;;  %v209_v48 = vpop.f32.mrb[12].mxu0  ;;  %v282_v49 = vpop.f32.mrb[12].mxu1  ;;  %v443_v11 = vunpack.c.l.bf16 %v441_v0  ;;  %v668_v0 = vunpack.c.l.bf16 %v4094_v5 }
 0x118   :  { %v210_v54 = vadd.f32 %v209_v48, %v4078_v50  ;;  %v283_v55 = vadd.f32 %v282_v49, %v4080_v51  ;;  %v211_v28 = vpop.f32.mrb[13].mxu0  ;;  %v284_v7 = vpop.f32.mrb[13].mxu1 }
 0x119   :  { %v212_v44 = vadd.f32 %v211_v28, %v4082_v52  ;;  %v285_v45 = vadd.f32 %v284_v7, %v4084_v53  ;;  %v213_v46 = vpop.f32.mrb[14].mxu0  ;;  %v286_v47 = vpop.f32.mrb[14].mxu1 }
 0x11a   :  { %v214_v58 = vadd.f32 %v213_v46, %v4078_v50  ;;  %v287_v56 = vadd.f32 %v286_v47, %v4080_v51  ;;  %v215_v57 = vpop.f32.mrb[15].mxu0  ;;  %v288_v59 = vpop.f32.mrb[15].mxu1  ;;  %v556_v50 = vunpack.c.l.bf16 %v4092_v4 }
 0x11b   :  { %v4141_v1 = vpack.c.bf16 %v212_v44, %v210_v54  ;;  %v4143_v48 = vpack.c.bf16 %v285_v45, %v283_v55  ;;  %v216_v49 = vadd.f32 %v215_v57, %v4082_v52  ;;  %v289_v28 = vadd.f32 %v288_v59, %v4084_v53 }
 0x11d   :  { %4776 = vst [vmem:[#allocation15_spill] sm:$0xff] %v4143_v48  ;;  %v4147_v16 = vpack.c.bf16 %v216_v49, %v214_v58  ;;  %v4149_v7 = vpack.c.bf16 %v289_v28, %v287_v56  ;;  %v778_v56 = vrot.slane %v4094_v5, 4 }
 0x11f   :  { %v542_v51 = vpop.f32.mrb[16].mxu0  ;;  %v655_v46 = vpop.f32.mrb[16].mxu1 }
 0x120   :  { %v548_v47 = vadd.f32 %v542_v51, %v443_v11  ;;  %v661_v61 = vadd.f32 %v655_v46, %v556_v50  ;;  %v2851_v60 = vpop.f32.mrb[17].mxu0  ;;  %v2871_v54 = vpop.f32.mrb[17].mxu1  ;;  %v780_v11 = vunpack.c.l.bf16 %v778_v56 }
 0x121   :  { %v545_v44 = vpop.f32.mrb[18].mxu0  ;;  %v658_v55 = vpop.f32.mrb[18].mxu1 }
 0x122   :  { %v2852_v45 = vpop.f32.mrb[19].mxu0  ;;  %v2872_v48 = vpop.f32.mrb[19].mxu1  ;;  %v2463_v52 = vmul.f32 -1.442695, %v548_v47  ;;  %v2472_v57 = vmul.f32 -1.442695, %v661_v61 }
 0x124   :  { %3584 = vpow2.f32 %v2463_v52 }
 0x125   :  { %3586 = vpow2.f32 %v2472_v57 }
 0x12e   :  { %v3585_v53 = vpop.eup %3584 }
 0x12f   :  { %v3587_v58 = vpop.eup %3586  ;;  %v552_v59 = vadd.f32 1.0, %v3585_v53 }
 0x130   :  { %v665_v4 = vadd.f32 1.0, %v3587_v58 }
 0x131   :  { %3588 = vrcp.f32 %v552_v59 }
 0x132   :  { %3590 = vrcp.f32 %v665_v4 }
 0x13b   :  { %v3589_v55 = vpop.eup %3588 }
 0x13c   :  { %v3591_v45 = vpop.eup %3590  ;;  %v555_v5 = vmul.f32 0.0, %v3589_v55 }
 0x13f   :  { %v767_v49 = vpop.f32.mrb[20].mxu0  ;;  %v879_v60 = vpop.f32.mrb[20].mxu1 }
 0x140   :  { %v773_v28 = vadd.f32 %v767_v49, %v668_v0  ;;  %v885_v50 = vadd.f32 %v879_v60, %v780_v11  ;;  %v2891_v51 = vpop.f32.mrb[21].mxu0  ;;  %v2911_v48 = vpop.f32.mrb[21].mxu1  ;;  %v4777_v49 = vmov 0.0  }
 0x141   :  { %v770_v61 = vpop.f32.mrb[22].mxu0  ;;  %v882_v46 = vpop.f32.mrb[22].mxu1 }
 0x142   :  { %3592 = vtanh.f32 %v773_v28  ;;  %v2489_v47 = vmul.f32 -1.442695, %v885_v50  ;;  %v2892_v54 = vpop.f32.mrb[23].mxu0  ;;  %v2912_v44 = vpop.f32.mrb[23].mxu1 }
 0x144   :  { %3594 = vpow2.f32 %v2489_v47 }
 0x14c   :  { %v3593_v52 = vpop.eup %3592 }
 0x14d   :  { %v775_v57 = vmul.f32 %v3593_v52, %v3591_v45  ;;  %v1044_v45 = vrot.slane %v4100_v43, 4 }
 0x14e   :  { %v3595_v53 = vpop.eup %3594 }
 0x14f   :  { %v4154_v58 = vadd.f32 %v775_v57, %v555_v5  ;;  %v889_v56 = vadd.f32 1.0, %v3595_v53  ;;  %v998_v5 = vunpack.c.l.bf16 %v4100_v43  ;;  %v1046_v57 = vunpack.c.l.bf16 %v1044_v45  ;;  %v4285_v45 = vld [vmem:[#allocation5 + $0x24] ss:$16 sps:$4 sm:$0xff]  }
 0x151   :  { %3596 = vtanh.f32 %v4154_v58 }
 0x152   :  { %3598 = vrcp.f32 %v889_v56 }
 0x15b   :  { %v3597_v59 = vpop.eup %3596 }
 0x15c   :  { %v3599_v4 = vpop.eup %3598 }
 0x15d   :  { %v893_v0 = vmul.f32 %v3599_v4, %v3597_v59 }
 0x15f   :  { %v894_v11 = vpack.c.bf16 %v893_v0, %v893_v0 }
 0x161   :  { %2930 = vmatmul.mubr.bf16.vlgmr.msra.gmra.mrb[24].mxu0 %v894_v11  ;;  %2950 = vmatmul.mubr.bf16.vlgmr.msra.gmra.mrb[24].mxu1 %v894_v11 }
 0x162   :  { %2954 = vmatpush3.bf16.msra.mxu0 %v3963_v26  ;;  %2974 = vmatpush3.bf16.msra.mxu1 %v3967_v27 }
 0x163   :  { %2955 = vmatprep.subr.bf16.mxu0 %v4777_v49  ;;  %2975 = vmatprep.subr.bf16.mxu1 %v4777_v49 }
 0x164   :  { %2969 = vmatprep.mubr.msk.bf16.mxu0 %vm3804_vm1, %v4777_v49  ;;  %2989 = vmatprep.mubr.msk.bf16.mxu1 %vm3804_vm1, %v4777_v49 }
 0x166   :  { %2956 = vmatpush3.bf16.msra.mxu0 %v3975_v29  ;;  %2976 = vmatpush3.bf16.msra.mxu1 %v3977_v30 }
 0x167   :  { %2957 = vmatprep.subr.bf16.mxu0 %v4777_v49  ;;  %2977 = vmatprep.subr.bf16.mxu1 %v4777_v49 }
 0x16a   :  { %2958 = vmatpush3.bf16.msra.mxu0 %v3987_v31  ;;  %2978 = vmatpush3.bf16.msra.mxu1 %v3989_v32 }
 0x16b   :  { %2959 = vmatprep.subr.bf16.mxu0 %v4777_v49  ;;  %2979 = vmatprep.subr.bf16.mxu1 %v4777_v49 }
 0x16e   :  { %2960 = vmatpush3.bf16.msra.mxu0 %v3995_v33  ;;  %2980 = vmatpush3.bf16.msra.mxu1 %v3997_v34 }
 0x16f   :  { %2961 = vmatprep.subr.bf16.mxu0 %v4777_v49  ;;  %2981 = vmatprep.subr.bf16.mxu1 %v4777_v49 }
 0x172   :  { %2962 = vmatpush3.bf16.msra.mxu0 %v4003_v35  ;;  %2982 = vmatpush3.bf16.msra.mxu1 %v4005_v36 }
 0x173   :  { %2963 = vmatprep.subr.bf16.mxu0 %v4777_v49  ;;  %2983 = vmatprep.subr.bf16.mxu1 %v4777_v49 }
 0x176   :  { %2964 = vmatpush3.bf16.msra.mxu0 %v4011_v37  ;;  %2984 = vmatpush3.bf16.msra.mxu1 %v4013_v38 }
 0x177   :  { %2965 = vmatprep.subr.bf16.mxu0 %v4777_v49  ;;  %2985 = vmatprep.subr.bf16.mxu1 %v4777_v49 }
 0x17a   :  { %2966 = vmatpush3.bf16.msra.mxu0 %v4019_v39  ;;  %2986 = vmatpush3.bf16.msra.mxu1 %v4021_v40 }
 0x17b   :  { %2967 = vmatprep.subr.bf16.mxu0 %v4777_v49  ;;  %2987 = vmatprep.subr.bf16.mxu1 %v4777_v49 }
 0x17e   :  { %2968 = vmatpush3.bf16.msra.mxu0 %v4027_v41  ;;  %2988 = vmatpush3.bf16.msra.mxu1 %v4029_v42 }
 0x17f   :  { %2993 = vmatprep.subr.bf16.mxu0 %v4777_v49  ;;  %3013 = vmatprep.subr.bf16.mxu1 %v4777_v49 }
 0x181   :  { %2970 = vmatmul.mubr.bf16.vlgmr.msra.gmra.mrb[28].mxu0 %v894_v11  ;;  %2990 = vmatmul.mubr.bf16.vlgmr.msra.gmra.mrb[28].mxu1 %v894_v11 }
 0x182   :  { %2994 = vmatpush3.bf16.msra.mxu0 %v3880_v6  ;;  %3014 = vmatpush3.bf16.msra.mxu1 %v3884_v8  ;;  %v899_v6 = vrot.slane %v4098_v21, 4 }
 0x183   :  { %2995 = vmatprep.subr.bf16.mxu0 %v4777_v49  ;;  %3015 = vmatprep.subr.bf16.mxu1 %v4777_v49 }
 0x184   :  { %3009 = vmatprep.mubr.msk.bf16.mxu0 %vm3804_vm1, %v4777_v49  ;;  %3029 = vmatprep.mubr.msk.bf16.mxu1 %vm3804_vm1, %v4777_v49  ;;  %v901_v8 = vunpack.c.l.bf16 %v899_v6 }
 0x186   :  { %2996 = vmatpush3.bf16.msra.mxu0 %v3888_v9  ;;  %3016 = vmatpush3.bf16.msra.mxu1 %v3892_v10  ;;  %v950_v9 = vunpack.c.l.bf16 %v4098_v21 }
 0x187   :  { %2997 = vmatprep.subr.bf16.mxu0 %v4777_v49  ;;  %3017 = vmatprep.subr.bf16.mxu1 %v4777_v49 }
 0x18a   :  { %2998 = vmatpush3.bf16.msra.mxu0 %v3899_v12  ;;  %3018 = vmatpush3.bf16.msra.mxu1 %v3903_v13 }
 0x18b   :  { %2999 = vmatprep.subr.bf16.mxu0 %v4777_v49  ;;  %3019 = vmatprep.subr.bf16.mxu1 %v4777_v49 }
 0x18e   :  { %3000 = vmatpush3.bf16.msra.mxu0 %v3909_v14  ;;  %3020 = vmatpush3.bf16.msra.mxu1 %v3913_v15 }
 0x18f   :  { %3001 = vmatprep.subr.bf16.mxu0 %v4777_v49  ;;  %3021 = vmatprep.subr.bf16.mxu1 %v4777_v49 }
 0x192   :  { %3002 = vmatpush3.bf16.msra.mxu0 %v3920_v17  ;;  %3022 = vmatpush3.bf16.msra.mxu1 %v3924_v18 }
 0x193   :  { %3003 = vmatprep.subr.bf16.mxu0 %v4777_v49  ;;  %3023 = vmatprep.subr.bf16.mxu1 %v4777_v49 }
 0x196   :  { %3004 = vmatpush3.bf16.msra.mxu0 %v3930_v19  ;;  %3024 = vmatpush3.bf16.msra.mxu1 %v3934_v20 }
 0x197   :  { %3005 = vmatprep.subr.bf16.mxu0 %v4777_v49  ;;  %3025 = vmatprep.subr.bf16.mxu1 %v4777_v49 }
 0x19a   :  { %3006 = vmatpush3.bf16.msra.mxu0 %v3941_v22  ;;  %3026 = vmatpush3.bf16.msra.mxu1 %v3945_v23 }
 0x19b   :  { %3007 = vmatprep.subr.bf16.mxu0 %v4777_v49  ;;  %3027 = vmatprep.subr.bf16.mxu1 %v4777_v49 }
 0x19e   :  { %3008 = vmatpush3.bf16.msra.mxu0 %v3951_v24  ;;  %3028 = vmatpush3.bf16.msra.mxu1 %v3955_v25 }
 0x19f   :  { %3033 = vmatprep.subr.bf16.mxu0 %v4777_v49  ;;  %3053 = vmatprep.subr.bf16.mxu1 %v4777_v49 }
 0x234   :  { %v936_v10 = vpop.f32.mrb[24].mxu0  ;;  %v985_v12 = vpop.f32.mrb[24].mxu1 }
 0x235   :  { %v942_v13 = vadd.f32 %v936_v10, %v901_v8  ;;  %v991_v60 = vadd.f32 %v985_v12, %v950_v9  ;;  %v2931_v28 = vpop.f32.mrb[25].mxu0  ;;  %v2951_v50 = vpop.f32.mrb[25].mxu1 }
 0x236   :  { %v939_v51 = vpop.f32.mrb[26].mxu0  ;;  %v988_v48 = vpop.f32.mrb[26].mxu1 }
 0x237   :  { %v2932_v61 = vpop.f32.mrb[27].mxu0  ;;  %v2952_v46 = vpop.f32.mrb[27].mxu1  ;;  %v2490_v47 = vmul.f32 -1.442695, %v942_v13  ;;  %v2491_v54 = vmul.f32 -1.442695, %v991_v60 }
 0x239   :  { %3600 = vpow2.f32 %v2490_v47 }
 0x23a   :  { %3602 = vpow2.f32 %v2491_v54 }
 0x243   :  { %v3601_v44 = vpop.eup %3600 }
 0x244   :  { %v3603_v55 = vpop.eup %3602  ;;  %v946_v52 = vadd.f32 1.0, %v3601_v44 }
 0x245   :  { %v995_v21 = vadd.f32 1.0, %v3603_v55  ;;  %v4276_v55 = vld [vmem:[#allocation5] ss:$16 sps:$4 sm:$0xff]  }
 0x246   :  { %3604 = vrcp.f32 %v946_v52  ;;  %v4288_v52 = vld [vmem:[#allocation5 + $0x20] ss:$16 sps:$4 sm:$0xff]  }
 0x247   :  { %3606 = vrcp.f32 %v995_v21  ;;  %v4293_v21 = vld [vmem:[#allocation5 + $0x44] ss:$16 sps:$4 sm:$0xff]  }
 0x250   :  { %v3605_v13 = vpop.eup %3604 }
 0x251   :  { %v3607_v60 = vpop.eup %3606  ;;  %v949_v43 = vmul.f32 %v3605_v13, %v4154_v58  ;;  %v4273_v58 = vld [vmem:[#allocation5 + $0x4] ss:$16 sps:$4 sm:$0xff]  }
 0x254   :  { %v1033_v53 = vpop.f32.mrb[28].mxu0  ;;  %v1081_v56 = vpop.f32.mrb[28].mxu1 }
 0x255   :  { %v1039_v59 = vadd.f32 %v1033_v53, %v998_v5  ;;  %v1087_v4 = vadd.f32 %v1081_v56, %v1046_v57  ;;  %v2971_v0 = vpop.f32.mrb[29].mxu0  ;;  %v2991_v11 = vpop.f32.mrb[29].mxu1  ;;  %v4296_v5 = vld [vmem:[#allocation5 + $0x40] ss:$16 sps:$4 sm:$0xff]  }
 0x256   :  { %v1036_v6 = vpop.f32.mrb[30].mxu0  ;;  %v1084_v8 = vpop.f32.mrb[30].mxu1 }
 0x257   :  { %3608 = vtanh.f32 %v1039_v59  ;;  %v2492_v9 = vmul.f32 -1.442695, %v1087_v4  ;;  %v2972_v10 = vpop.f32.mrb[31].mxu0  ;;  %v2992_v12 = vpop.f32.mrb[31].mxu1  ;;  %v1246_v6 = vrot.slane %v4110_v63, 4 }
 0x259   :  { %3610 = vpow2.f32 %v2492_v9  ;;  %v1200_v9 = vunpack.c.l.bf16 %v4110_v63  ;;  %v1248_v10 = vunpack.c.l.bf16 %v1246_v6 }
 0x261   :  { %v3609_v28 = vpop.eup %3608 }
 0x262   :  { %v1041_v50 = vmul.f32 %v3609_v28, %v3607_v60 }
 0x263   :  { %v3611_v51 = vpop.eup %3610 }
 0x264   :  { %v4234_v48 = vadd.f32 %v1041_v50, %v949_v43  ;;  %v1091_v61 = vadd.f32 1.0, %v3611_v51 }
 0x266   :  { %3612 = vtanh.f32 %v4234_v48 }
 0x267   :  { %3614 = vrcp.f32 %v1091_v61 }
 0x270   :  { %v3613_v46 = vpop.eup %3612 }
 0x271   :  { %v3615_v47 = vpop.eup %3614 }
 0x272   :  { %v1095_v54 = vmul.f32 %v3615_v47, %v3613_v46 }
 0x274   :  { %v1096_v44 = vpack.c.bf16 %v1095_v54, %v1095_v54 }
 0x276   :  { %3010 = vmatmul.mubr.bf16.vlgmr.msra.gmra.mrb[32].mxu0 %v1096_v44  ;;  %3030 = vmatmul.mubr.bf16.vlgmr.msra.gmra.mrb[32].mxu1 %v1096_v44 }
 0x277   :  { %3034 = vmatpush3.bf16.msra.mxu0 %v3963_v26  ;;  %3054 = vmatpush3.bf16.msra.mxu1 %v3967_v27 }
 0x278   :  { %3035 = vmatprep.subr.bf16.mxu0 %v4777_v49  ;;  %3055 = vmatprep.subr.bf16.mxu1 %v4777_v49 }
 0x279   :  { %3049 = vmatprep.mubr.msk.bf16.mxu0 %vm3804_vm1, %v4777_v49  ;;  %3069 = vmatprep.mubr.msk.bf16.mxu1 %vm3804_vm1, %v4777_v49 }
 0x27b   :  { %3036 = vmatpush3.bf16.msra.mxu0 %v3975_v29  ;;  %3056 = vmatpush3.bf16.msra.mxu1 %v3977_v30 }
 0x27c   :  { %3037 = vmatprep.subr.bf16.mxu0 %v4777_v49  ;;  %3057 = vmatprep.subr.bf16.mxu1 %v4777_v49 }
 0x27f   :  { %3038 = vmatpush3.bf16.msra.mxu0 %v3987_v31  ;;  %3058 = vmatpush3.bf16.msra.mxu1 %v3989_v32 }
 0x280   :  { %3039 = vmatprep.subr.bf16.mxu0 %v4777_v49  ;;  %3059 = vmatprep.subr.bf16.mxu1 %v4777_v49 }
 0x283   :  { %3040 = vmatpush3.bf16.msra.mxu0 %v3995_v33  ;;  %3060 = vmatpush3.bf16.msra.mxu1 %v3997_v34 }
 0x284   :  { %3041 = vmatprep.subr.bf16.mxu0 %v4777_v49  ;;  %3061 = vmatprep.subr.bf16.mxu1 %v4777_v49 }
 0x287   :  { %3042 = vmatpush3.bf16.msra.mxu0 %v4003_v35  ;;  %3062 = vmatpush3.bf16.msra.mxu1 %v4005_v36 }
 0x288   :  { %3043 = vmatprep.subr.bf16.mxu0 %v4777_v49  ;;  %3063 = vmatprep.subr.bf16.mxu1 %v4777_v49 }
 0x28b   :  { %3044 = vmatpush3.bf16.msra.mxu0 %v4011_v37  ;;  %3064 = vmatpush3.bf16.msra.mxu1 %v4013_v38 }
 0x28c   :  { %3045 = vmatprep.subr.bf16.mxu0 %v4777_v49  ;;  %3065 = vmatprep.subr.bf16.mxu1 %v4777_v49 }
 0x28f   :  { %3046 = vmatpush3.bf16.msra.mxu0 %v4019_v39  ;;  %3066 = vmatpush3.bf16.msra.mxu1 %v4021_v40 }
 0x290   :  { %3047 = vmatprep.subr.bf16.mxu0 %v4777_v49  ;;  %3067 = vmatprep.subr.bf16.mxu1 %v4777_v49 }
 0x293   :  { %3048 = vmatpush3.bf16.msra.mxu0 %v4027_v41  ;;  %3068 = vmatpush3.bf16.msra.mxu1 %v4029_v42 }
 0x294   :  { %3073 = vmatprep.subr.bf16.mxu0 %v4777_v49  ;;  %3093 = vmatprep.subr.bf16.mxu1 %v4777_v49 }
 0x296   :  { %3050 = vmatmul.mubr.bf16.vlgmr.msra.gmra.mrb[36].mxu0 %v1096_v44  ;;  %3070 = vmatmul.mubr.bf16.vlgmr.msra.gmra.mrb[36].mxu1 %v1096_v44 }
 0x297   :  { %3074 = vmatpush3.bf16.msra.mxu0 %v4273_v58  ;;  %3094 = vmatpush3.bf16.msra.mxu1 %v4276_v55 }
 0x298   :  { %3075 = vmatprep.subr.bf16.mxu0 %v4777_v49  ;;  %3095 = vmatprep.subr.bf16.mxu1 %v4777_v49 }
 0x299   :  { %3089 = vmatprep.mubr.msk.bf16.mxu0 %vm3804_vm1, %v4777_v49  ;;  %3109 = vmatprep.mubr.msk.bf16.mxu1 %vm3804_vm1, %v4777_v49 }
 0x29b   :  { %3076 = vmatpush3.bf16.msra.mxu0 %v4285_v45  ;;  %3096 = vmatpush3.bf16.msra.mxu1 %v4288_v52 }
 0x29c   :  { %3077 = vmatprep.subr.bf16.mxu0 %v4777_v49  ;;  %3097 = vmatprep.subr.bf16.mxu1 %v4777_v49 }
 0x29f   :  { %3078 = vmatpush3.bf16.msra.mxu0 %v4293_v21  ;;  %3098 = vmatpush3.bf16.msra.mxu1 %v4296_v5 }
 0x2a0   :  { %3079 = vmatprep.subr.bf16.mxu0 %v4777_v49  ;;  %3099 = vmatprep.subr.bf16.mxu1 %v4777_v49 }
 0x2a3   :  { %3080 = vmatpush3.bf16.msra.mxu0 %v3909_v14  ;;  %3100 = vmatpush3.bf16.msra.mxu1 %v3913_v15  ;;  %v1101_v14 = vrot.slane %v4108_v62, 4 }
 0x2a4   :  { %3081 = vmatprep.subr.bf16.mxu0 %v4777_v49  ;;  %3101 = vmatprep.subr.bf16.mxu1 %v4777_v49 }
 0x2a5   :  { %v1103_v15 = vunpack.c.l.bf16 %v1101_v14 }
 0x2a7   :  { %3082 = vmatpush3.bf16.msra.mxu0 %v3920_v17  ;;  %3102 = vmatpush3.bf16.msra.mxu1 %v3924_v18  ;;  %v1152_v17 = vunpack.c.l.bf16 %v4108_v62 }
 0x2a8   :  { %3083 = vmatprep.subr.bf16.mxu0 %v4777_v49  ;;  %3103 = vmatprep.subr.bf16.mxu1 %v4777_v49 }
 0x2ab   :  { %3084 = vmatpush3.bf16.msra.mxu0 %v3930_v19  ;;  %3104 = vmatpush3.bf16.msra.mxu1 %v3934_v20 }
 0x2ac   :  { %3085 = vmatprep.subr.bf16.mxu0 %v4777_v49  ;;  %3105 = vmatprep.subr.bf16.mxu1 %v4777_v49 }
 0x2af   :  { %3086 = vmatpush3.bf16.msra.mxu0 %v3941_v22  ;;  %3106 = vmatpush3.bf16.msra.mxu1 %v3945_v23 }
 0x2b0   :  { %3087 = vmatprep.subr.bf16.mxu0 %v4777_v49  ;;  %3107 = vmatprep.subr.bf16.mxu1 %v4777_v49 }
 0x2b3   :  { %3088 = vmatpush3.bf16.msra.mxu0 %v3951_v24  ;;  %3108 = vmatpush3.bf16.msra.mxu1 %v3955_v25 }
 0x2b4   :  { %3113 = vmatprep.subr.bf16.mxu0 %v4777_v49  ;;  %3133 = vmatprep.subr.bf16.mxu1 %v4777_v49 }
 0x349   :  { %v1138_v18 = vpop.f32.mrb[32].mxu0  ;;  %v1187_v19 = vpop.f32.mrb[32].mxu1 }
 0x34a   :  { %v1144_v20 = vadd.f32 %v1138_v18, %v1103_v15  ;;  %v1193_v22 = vadd.f32 %v1187_v19, %v1152_v17  ;;  %v3011_v23 = vpop.f32.mrb[33].mxu0  ;;  %v3031_v57 = vpop.f32.mrb[33].mxu1 }
 0x34b   :  { %v1141_v53 = vpop.f32.mrb[34].mxu0  ;;  %v1190_v56 = vpop.f32.mrb[34].mxu1 }
 0x34c   :  { %v3012_v24 = vpop.f32.mrb[35].mxu0  ;;  %v3032_v59 = vpop.f32.mrb[35].mxu1  ;;  %v2493_v25 = vmul.f32 -1.442695, %v1144_v20  ;;  %v2494_v4 = vmul.f32 -1.442695, %v1193_v22 }
 0x34e   :  { %3616 = vpow2.f32 %v2493_v25 }
 0x34f   :  { %3618 = vpow2.f32 %v2494_v4 }
 0x358   :  { %v3617_v0 = vpop.eup %3616 }
 0x359   :  { %v3619_v11 = vpop.eup %3618  ;;  %v1148_v8 = vadd.f32 1.0, %v3617_v0 }
 0x35a   :  { %v1197_v62 = vadd.f32 1.0, %v3619_v11 }
 0x35b   :  { %3620 = vrcp.f32 %v1148_v8 }
 0x35c   :  { %3622 = vrcp.f32 %v1197_v62 }
 0x365   :  { %v3621_v44 = vpop.eup %3620 }
 0x366   :  { %v3623_v14 = vpop.eup %3622  ;;  %v1151_v63 = vmul.f32 %v3621_v44, %v4234_v48 }
 0x369   :  { %v1235_v12 = vpop.f32.mrb[36].mxu0  ;;  %v1283_v13 = vpop.f32.mrb[36].mxu1 }
 0x36a   :  { %v1241_v60 = vadd.f32 %v1235_v12, %v1200_v9  ;;  %v1289_v28 = vadd.f32 %v1283_v13, %v1248_v10  ;;  %v3051_v43 = vpop.f32.mrb[37].mxu0  ;;  %v3071_v50 = vpop.f32.mrb[37].mxu1  ;;  %v1448_v9 = vrot.slane %v4116_v3, 4  ;;  %v1402_v12 = vunpack.c.l.bf16 %v4116_v3 }
 0x36b   :  { %v1238_v51 = vpop.f32.mrb[38].mxu0  ;;  %v1286_v61 = vpop.f32.mrb[38].mxu1 }
 0x36c   :  { %3624 = vtanh.f32 %v1241_v60  ;;  %v2495_v46 = vmul.f32 -1.442695, %v1289_v28  ;;  %v3052_v47 = vpop.f32.mrb[39].mxu0  ;;  %v3072_v54 = vpop.f32.mrb[39].mxu1  ;;  %v1450_v13 = vunpack.c.l.bf16 %v1448_v9  ;;  %v4778_v9 = vld [vmem:[#allocation11_spill] sm:$0xff] }
 0x36e   :  { %3626 = vpow2.f32 %v2495_v46 }
 0x376   :  { %v3625_v15 = vpop.eup %3624 }
 0x377   :  { %v1243_v17 = vmul.f32 %v3625_v15, %v3623_v14 }
 0x378   :  { %v3627_v18 = vpop.eup %3626 }
 0x379   :  { %v4326_v19 = vadd.f32 %v1243_v17, %v1151_v63  ;;  %v1293_v20 = vadd.f32 1.0, %v3627_v18 }
 0x37b   :  { %3628 = vtanh.f32 %v4326_v19 }
 0x37c   :  { %3630 = vrcp.f32 %v1293_v20 }
 0x385   :  { %v3629_v22 = vpop.eup %3628 }
 0x386   :  { %v3631_v23 = vpop.eup %3630 }
 0x387   :  { %v1297_v57 = vmul.f32 %v3631_v23, %v3629_v22 }
 0x389   :  { %v1298_v53 = vpack.c.bf16 %v1297_v57, %v1297_v57 }
 0x38b   :  { %3090 = vmatmul.mubr.bf16.vlgmr.msra.gmra.mrb[40].mxu0 %v1298_v53  ;;  %3110 = vmatmul.mubr.bf16.vlgmr.msra.gmra.mrb[40].mxu1 %v1298_v53 }
 0x38c   :  { %3114 = vmatpush3.bf16.msra.mxu0 %v3963_v26  ;;  %3134 = vmatpush3.bf16.msra.mxu1 %v3967_v27  ;;  %v4381_v26 = vld [vmem:[#allocation5 + $0x64] ss:$16 sps:$4 sm:$0xff]   ;;  %v4384_v27 = vld [vmem:[#allocation5 + $0x60] ss:$16 sps:$4 sm:$0xff]  }
 0x38d   :  { %3115 = vmatprep.subr.bf16.mxu0 %v4777_v49  ;;  %3135 = vmatprep.subr.bf16.mxu1 %v4777_v49 }
 0x38e   :  { %3129 = vmatprep.mubr.msk.bf16.mxu0 %vm3804_vm1, %v4777_v49  ;;  %3149 = vmatprep.mubr.msk.bf16.mxu1 %vm3804_vm1, %v4777_v49 }
 0x390   :  { %3116 = vmatpush3.bf16.msra.mxu0 %v3975_v29  ;;  %3136 = vmatpush3.bf16.msra.mxu1 %v3977_v30  ;;  %v4389_v29 = vld [vmem:[#allocation5 + $0x84] ss:$16 sps:$4 sm:$0xff]   ;;  %v4392_v30 = vld [vmem:[#allocation5 + $0x80] ss:$16 sps:$4 sm:$0xff]  }
 0x391   :  { %3117 = vmatprep.subr.bf16.mxu0 %v4777_v49  ;;  %3137 = vmatprep.subr.bf16.mxu1 %v4777_v49 }
 0x394   :  { %3118 = vmatpush3.bf16.msra.mxu0 %v3987_v31  ;;  %3138 = vmatpush3.bf16.msra.mxu1 %v3989_v32  ;;  %v4397_v31 = vld [vmem:[#allocation5 + $0xa4] ss:$16 sps:$4 sm:$0xff]   ;;  %v4400_v32 = vld [vmem:[#allocation5 + $0xa0] ss:$16 sps:$4 sm:$0xff]  }
 0x395   :  { %3119 = vmatprep.subr.bf16.mxu0 %v4777_v49  ;;  %3139 = vmatprep.subr.bf16.mxu1 %v4777_v49 }
 0x398   :  { %3120 = vmatpush3.bf16.msra.mxu0 %v3995_v33  ;;  %3140 = vmatpush3.bf16.msra.mxu1 %v3997_v34  ;;  %v4405_v33 = vld [vmem:[#allocation5 + $0xc4] ss:$16 sps:$4 sm:$0xff]   ;;  %v4408_v34 = vld [vmem:[#allocation5 + $0xc0] ss:$16 sps:$4 sm:$0xff]  }
 0x399   :  { %3121 = vmatprep.subr.bf16.mxu0 %v4777_v49  ;;  %3141 = vmatprep.subr.bf16.mxu1 %v4777_v49 }
 0x39c   :  { %3122 = vmatpush3.bf16.msra.mxu0 %v4003_v35  ;;  %3142 = vmatpush3.bf16.msra.mxu1 %v4005_v36  ;;  %v4413_v35 = vld [vmem:[#allocation5 + $0xe4] ss:$16 sps:$4 sm:$0xff]   ;;  %v4416_v36 = vld [vmem:[#allocation5 + $0xe0] ss:$16 sps:$4 sm:$0xff]  }
 0x39d   :  { %3123 = vmatprep.subr.bf16.mxu0 %v4777_v49  ;;  %3143 = vmatprep.subr.bf16.mxu1 %v4777_v49 }
 0x3a0   :  { %3124 = vmatpush3.bf16.msra.mxu0 %v4011_v37  ;;  %3144 = vmatpush3.bf16.msra.mxu1 %v4013_v38  ;;  %v1303_v37 = vrot.slane %v4114_v2, 4 }
 0x3a1   :  { %3125 = vmatprep.subr.bf16.mxu0 %v4777_v49  ;;  %3145 = vmatprep.subr.bf16.mxu1 %v4777_v49 }
 0x3a2   :  { %v1305_v38 = vunpack.c.l.bf16 %v1303_v37 }
 0x3a4   :  { %3126 = vmatpush3.bf16.msra.mxu0 %v4019_v39  ;;  %3146 = vmatpush3.bf16.msra.mxu1 %v4021_v40  ;;  %v1354_v39 = vunpack.c.l.bf16 %v4114_v2 }
 0x3a5   :  { %3127 = vmatprep.subr.bf16.mxu0 %v4777_v49  ;;  %3147 = vmatprep.subr.bf16.mxu1 %v4777_v49 }
 0x3a8   :  { %3128 = vmatpush3.bf16.msra.mxu0 %v4027_v41  ;;  %3148 = vmatpush3.bf16.msra.mxu1 %v4029_v42 }
 0x3a9   :  { %3153 = vmatprep.subr.bf16.mxu0 %v4777_v49  ;;  %3173 = vmatprep.subr.bf16.mxu1 %v4777_v49 }
 0x3ab   :  { %3130 = vmatmul.mubr.bf16.vlgmr.msra.gmra.mrb[44].mxu0 %v1298_v53  ;;  %3150 = vmatmul.mubr.bf16.vlgmr.msra.gmra.mrb[44].mxu1 %v1298_v53 }
 0x3ac   :  { %3154 = vmatpush3.bf16.msra.mxu0 %v4273_v58  ;;  %3174 = vmatpush3.bf16.msra.mxu1 %v4276_v55 }
 0x3ad   :  { %3155 = vmatprep.subr.bf16.mxu0 %v4777_v49  ;;  %3175 = vmatprep.subr.bf16.mxu1 %v4777_v49 }
 0x3ae   :  { %3169 = vmatprep.mubr.msk.bf16.mxu0 %vm3804_vm1, %v4777_v49  ;;  %3189 = vmatprep.mubr.msk.bf16.mxu1 %vm3804_vm1, %v4777_v49 }
 0x3b0   :  { %3156 = vmatpush3.bf16.msra.mxu0 %v4285_v45  ;;  %3176 = vmatpush3.bf16.msra.mxu1 %v4288_v52 }
 0x3b1   :  { %3157 = vmatprep.subr.bf16.mxu0 %v4777_v49  ;;  %3177 = vmatprep.subr.bf16.mxu1 %v4777_v49 }
 0x3b4   :  { %3158 = vmatpush3.bf16.msra.mxu0 %v4293_v21  ;;  %3178 = vmatpush3.bf16.msra.mxu1 %v4296_v5 }
 0x3b5   :  { %3159 = vmatprep.subr.bf16.mxu0 %v4777_v49  ;;  %3179 = vmatprep.subr.bf16.mxu1 %v4777_v49 }
 0x3b8   :  { %3160 = vmatpush3.bf16.msra.mxu0 %v4381_v26  ;;  %3180 = vmatpush3.bf16.msra.mxu1 %v4384_v27 }
 0x3b9   :  { %3161 = vmatprep.subr.bf16.mxu0 %v4777_v49  ;;  %3181 = vmatprep.subr.bf16.mxu1 %v4777_v49 }
 0x3bc   :  { %3162 = vmatpush3.bf16.msra.mxu0 %v4389_v29  ;;  %3182 = vmatpush3.bf16.msra.mxu1 %v4392_v30 }
 0x3bd   :  { %3163 = vmatprep.subr.bf16.mxu0 %v4777_v49  ;;  %3183 = vmatprep.subr.bf16.mxu1 %v4777_v49 }
 0x3c0   :  { %3164 = vmatpush3.bf16.msra.mxu0 %v4397_v31  ;;  %3184 = vmatpush3.bf16.msra.mxu1 %v4400_v32 }
 0x3c1   :  { %3165 = vmatprep.subr.bf16.mxu0 %v4777_v49  ;;  %3185 = vmatprep.subr.bf16.mxu1 %v4777_v49 }
 0x3c4   :  { %3166 = vmatpush3.bf16.msra.mxu0 %v4405_v33  ;;  %3186 = vmatpush3.bf16.msra.mxu1 %v4408_v34 }
 0x3c5   :  { %3167 = vmatprep.subr.bf16.mxu0 %v4777_v49  ;;  %3187 = vmatprep.subr.bf16.mxu1 %v4777_v49 }
 0x3c8   :  { %3168 = vmatpush3.bf16.msra.mxu0 %v4413_v35  ;;  %3188 = vmatpush3.bf16.msra.mxu1 %v4416_v36 }
 0x3c9   :  { %3193 = vmatprep.subr.bf16.mxu0 %v4777_v49  ;;  %3213 = vmatprep.subr.bf16.mxu1 %v4777_v49 }
 0x45e   :  { %v1340_v40 = vpop.f32.mrb[40].mxu0  ;;  %v1389_v41 = vpop.f32.mrb[40].mxu1 }
 0x45f   :  { %v1346_v42 = vadd.f32 %v1340_v40, %v1305_v38  ;;  %v1395_v48 = vadd.f32 %v1389_v41, %v1354_v39  ;;  %v3091_v56 = vpop.f32.mrb[41].mxu0  ;;  %v3111_v24 = vpop.f32.mrb[41].mxu1  ;;  %v4429_v39 = vld [vmem:[#allocation5 + $0x8] ss:$16 sps:$4 sm:$0xff]   ;;  %v4432_v40 = vld [vmem:[#allocation5 + $0xc] ss:$16 sps:$4 sm:$0xff]  }
 0x460   :  { %v1343_v59 = vpop.f32.mrb[42].mxu0  ;;  %v1392_v25 = vpop.f32.mrb[42].mxu1  ;;  %v4444_v41 = vld [vmem:[#allocation5 + $0x2c] ss:$16 sps:$4 sm:$0xff]   ;;  %v4457_v56 = vld [vmem:[#allocation5 + $0x68] ss:$16 sps:$4 sm:$0xff]  }
 0x461   :  { %v3092_v4 = vpop.f32.mrb[43].mxu0  ;;  %v3112_v0 = vpop.f32.mrb[43].mxu1  ;;  %v2496_v11 = vmul.f32 -1.442695, %v1346_v42  ;;  %v2497_v6 = vmul.f32 -1.442695, %v1395_v48 }
 0x462   :  { %v4449_v42 = vld [vmem:[#allocation5 + $0x48] ss:$16 sps:$4 sm:$0xff]   ;;  %v4452_v48 = vld [vmem:[#allocation5 + $0x4c] ss:$16 sps:$4 sm:$0xff]  }
 0x463   :  { %3632 = vpow2.f32 %v2496_v11  ;;  %v4460_v24 = vld [vmem:[#allocation5 + $0x6c] ss:$16 sps:$4 sm:$0xff]   ;;  %v4465_v59 = vld [vmem:[#allocation5 + $0x88] ss:$16 sps:$4 sm:$0xff]  }
 0x464   :  { %3634 = vpow2.f32 %v2497_v6  ;;  %v4468_v25 = vld [vmem:[#allocation5 + $0x8c] ss:$16 sps:$4 sm:$0xff]   ;;  %v4473_v4 = vld [vmem:[#allocation5 + $0xa8] ss:$16 sps:$4 sm:$0xff]  }
 0x465   :  { %v4476_v0 = vld [vmem:[#allocation5 + $0xac] ss:$16 sps:$4 sm:$0xff]   ;;  %v4481_v11 = vld [vmem:[#allocation5 + $0xc8] ss:$16 sps:$4 sm:$0xff]  }
 0x466   :  { %v4484_v6 = vld [vmem:[#allocation5 + $0xcc] ss:$16 sps:$4 sm:$0xff]  }
 0x46d   :  { %v3633_v8 = vpop.eup %3632 }
 0x46e   :  { %v3635_v62 = vpop.eup %3634  ;;  %v1350_v10 = vadd.f32 1.0, %v3633_v8  ;;  %v4489_v8 = vld [vmem:[#allocation5 + $0xe8] ss:$16 sps:$4 sm:$0xff]  }
 0x46f   :  { %v1399_v2 = vadd.f32 1.0, %v3635_v62  ;;  %v4492_v62 = vld [vmem:[#allocation5 + $0xec] ss:$16 sps:$4 sm:$0xff]  }
 0x470   :  { %3636 = vrcp.f32 %v1350_v10  ;;  %v1505_v10 = vrot.slane %v4778_v9, 4 }
 0x471   :  { %3638 = vrcp.f32 %v1399_v2 }
 0x472   :  { %v1507_v2 = vunpack.c.l.bf16 %v1505_v10 }
 0x47a   :  { %v3637_v15 = vpop.eup %3636 }
 0x47b   :  { %v3639_v63 = vpop.eup %3638  ;;  %v1353_v3 = vmul.f32 %v3637_v15, %v4326_v19  ;;  %v4441_v19 = vld [vmem:[#allocation5 + $0x28] ss:$16 sps:$4 sm:$0xff]  }
 0x47e   :  { %v1437_v60 = vpop.f32.mrb[44].mxu0  ;;  %v1485_v28 = vpop.f32.mrb[44].mxu1 }
 0x47f   :  { %v1443_v43 = vadd.f32 %v1437_v60, %v1402_v12  ;;  %v1491_v50 = vadd.f32 %v1485_v28, %v1450_v13  ;;  %v3131_v51 = vpop.f32.mrb[45].mxu0  ;;  %v3151_v61 = vpop.f32.mrb[45].mxu1  ;;  %v1556_v12 = vunpack.c.l.bf16 %v4778_v9 }
 0x480   :  { %v1440_v46 = vpop.f32.mrb[46].mxu0  ;;  %v1488_v47 = vpop.f32.mrb[46].mxu1 }
 0x481   :  { %3640 = vtanh.f32 %v1443_v43  ;;  %v2498_v54 = vmul.f32 -1.442695, %v1491_v50  ;;  %v3132_v44 = vpop.f32.mrb[47].mxu0  ;;  %v3152_v14 = vpop.f32.mrb[47].mxu1 }
 0x483   :  { %3642 = vpow2.f32 %v2498_v54 }
 0x48b   :  { %v3641_v17 = vpop.eup %3640 }
 0x48c   :  { %v1445_v18 = vmul.f32 %v3641_v17, %v3639_v63  ;;  %v4779_v17 = vld [vmem:[#allocation12_spill] sm:$0xff] }
 0x48d   :  { %v3643_v20 = vpop.eup %3642 }
 0x48e   :  { %v4426_v22 = vadd.f32 %v1445_v18, %v1353_v3  ;;  %v1495_v23 = vadd.f32 1.0, %v3643_v20  ;;  %v1650_v3 = vrot.slane %v4779_v17, 4 }
 0x490   :  { %3644 = vtanh.f32 %v4426_v22 }
 0x491   :  { %3646 = vrcp.f32 %v1495_v23  ;;  %v1604_v23 = vunpack.c.l.bf16 %v4779_v17 }
 0x49a   :  { %v3645_v57 = vpop.eup %3644 }
 0x49b   :  { %v3647_v53 = vpop.eup %3646 }
 0x49c   :  { %v1499_v37 = vmul.f32 %v3647_v53, %v3645_v57  ;;  %v1652_v57 = vunpack.c.l.bf16 %v1650_v3 }
 0x49e   :  { %v1500_v38 = vpack.c.bf16 %v1499_v37, %v1499_v37 }
 0x4a0   :  { %3170 = vmatmul.mubr.bf16.vlgmr.msra.gmra.mrb[48].mxu0 %v1500_v38  ;;  %3190 = vmatmul.mubr.bf16.vlgmr.msra.gmra.mrb[48].mxu1 %v1500_v38 }
 0x4a1   :  { %3194 = vmatpush3.bf16.msra.mxu0 %v4429_v39  ;;  %3214 = vmatpush3.bf16.msra.mxu1 %v4432_v40 }
 0x4a2   :  { %3195 = vmatprep.subr.bf16.mxu0 %v4777_v49  ;;  %3215 = vmatprep.subr.bf16.mxu1 %v4777_v49 }
 0x4a3   :  { %3209 = vmatprep.mubr.msk.bf16.mxu0 %vm3804_vm1, %v4777_v49  ;;  %3229 = vmatprep.mubr.msk.bf16.mxu1 %vm3804_vm1, %v4777_v49 }
 0x4a5   :  { %3196 = vmatpush3.bf16.msra.mxu0 %v4441_v19  ;;  %3216 = vmatpush3.bf16.msra.mxu1 %v4444_v41 }
 0x4a6   :  { %3197 = vmatprep.subr.bf16.mxu0 %v4777_v49  ;;  %3217 = vmatprep.subr.bf16.mxu1 %v4777_v49 }
 0x4a9   :  { %3198 = vmatpush3.bf16.msra.mxu0 %v4449_v42  ;;  %3218 = vmatpush3.bf16.msra.mxu1 %v4452_v48 }
 0x4aa   :  { %3199 = vmatprep.subr.bf16.mxu0 %v4777_v49  ;;  %3219 = vmatprep.subr.bf16.mxu1 %v4777_v49 }
 0x4ad   :  { %3200 = vmatpush3.bf16.msra.mxu0 %v4457_v56  ;;  %3220 = vmatpush3.bf16.msra.mxu1 %v4460_v24 }
 0x4ae   :  { %3201 = vmatprep.subr.bf16.mxu0 %v4777_v49  ;;  %3221 = vmatprep.subr.bf16.mxu1 %v4777_v49 }
 0x4b1   :  { %3202 = vmatpush3.bf16.msra.mxu0 %v4465_v59  ;;  %3222 = vmatpush3.bf16.msra.mxu1 %v4468_v25 }
 0x4b2   :  { %3203 = vmatprep.subr.bf16.mxu0 %v4777_v49  ;;  %3223 = vmatprep.subr.bf16.mxu1 %v4777_v49 }
 0x4b5   :  { %3204 = vmatpush3.bf16.msra.mxu0 %v4473_v4  ;;  %3224 = vmatpush3.bf16.msra.mxu1 %v4476_v0 }
 0x4b6   :  { %3205 = vmatprep.subr.bf16.mxu0 %v4777_v49  ;;  %3225 = vmatprep.subr.bf16.mxu1 %v4777_v49 }
 0x4b9   :  { %3206 = vmatpush3.bf16.msra.mxu0 %v4481_v11  ;;  %3226 = vmatpush3.bf16.msra.mxu1 %v4484_v6 }
 0x4ba   :  { %3207 = vmatprep.subr.bf16.mxu0 %v4777_v49  ;;  %3227 = vmatprep.subr.bf16.mxu1 %v4777_v49 }
 0x4bd   :  { %3208 = vmatpush3.bf16.msra.mxu0 %v4489_v8  ;;  %3228 = vmatpush3.bf16.msra.mxu1 %v4492_v62 }
 0x4be   :  { %3233 = vmatprep.subr.bf16.mxu0 %v4777_v49  ;;  %3253 = vmatprep.subr.bf16.mxu1 %v4777_v49 }
 0x4c0   :  { %3210 = vmatmul.mubr.bf16.vlgmr.msra.gmra.mrb[52].mxu0 %v1500_v38  ;;  %3230 = vmatmul.mubr.bf16.vlgmr.msra.gmra.mrb[52].mxu1 %v1500_v38 }
 0x4c1   :  { %3234 = vmatpush3.bf16.msra.mxu0 %v4273_v58  ;;  %3254 = vmatpush3.bf16.msra.mxu1 %v4276_v55 }
 0x4c2   :  { %3235 = vmatprep.subr.bf16.mxu0 %v4777_v49  ;;  %3255 = vmatprep.subr.bf16.mxu1 %v4777_v49 }
 0x4c3   :  { %3249 = vmatprep.mubr.msk.bf16.mxu0 %vm3804_vm1, %v4777_v49  ;;  %3269 = vmatprep.mubr.msk.bf16.mxu1 %vm3804_vm1, %v4777_v49 }
 0x4c5   :  { %3236 = vmatpush3.bf16.msra.mxu0 %v4285_v45  ;;  %3256 = vmatpush3.bf16.msra.mxu1 %v4288_v52 }
 0x4c6   :  { %3237 = vmatprep.subr.bf16.mxu0 %v4777_v49  ;;  %3257 = vmatprep.subr.bf16.mxu1 %v4777_v49 }
 0x4c9   :  { %3238 = vmatpush3.bf16.msra.mxu0 %v4293_v21  ;;  %3258 = vmatpush3.bf16.msra.mxu1 %v4296_v5 }
 0x4ca   :  { %3239 = vmatprep.subr.bf16.mxu0 %v4777_v49  ;;  %3259 = vmatprep.subr.bf16.mxu1 %v4777_v49 }
 0x4cd   :  { %3240 = vmatpush3.bf16.msra.mxu0 %v4381_v26  ;;  %3260 = vmatpush3.bf16.msra.mxu1 %v4384_v27 }
 0x4ce   :  { %3241 = vmatprep.subr.bf16.mxu0 %v4777_v49  ;;  %3261 = vmatprep.subr.bf16.mxu1 %v4777_v49 }
 0x4d1   :  { %3242 = vmatpush3.bf16.msra.mxu0 %v4389_v29  ;;  %3262 = vmatpush3.bf16.msra.mxu1 %v4392_v30 }
 0x4d2   :  { %3243 = vmatprep.subr.bf16.mxu0 %v4777_v49  ;;  %3263 = vmatprep.subr.bf16.mxu1 %v4777_v49 }
 0x4d5   :  { %3244 = vmatpush3.bf16.msra.mxu0 %v4397_v31  ;;  %3264 = vmatpush3.bf16.msra.mxu1 %v4400_v32 }
 0x4d6   :  { %3245 = vmatprep.subr.bf16.mxu0 %v4777_v49  ;;  %3265 = vmatprep.subr.bf16.mxu1 %v4777_v49 }
 0x4d9   :  { %3246 = vmatpush3.bf16.msra.mxu0 %v4405_v33  ;;  %3266 = vmatpush3.bf16.msra.mxu1 %v4408_v34 }
 0x4da   :  { %3247 = vmatprep.subr.bf16.mxu0 %v4777_v49  ;;  %3267 = vmatprep.subr.bf16.mxu1 %v4777_v49 }
 0x4dd   :  { %3248 = vmatpush3.bf16.msra.mxu0 %v4413_v35  ;;  %3268 = vmatpush3.bf16.msra.mxu1 %v4416_v36 }
 0x4de   :  { %3273 = vmatprep.subr.bf16.mxu0 %v4777_v49  ;;  %3293 = vmatprep.subr.bf16.mxu1 %v4777_v49 }
 0x573   :  { %v1542_v13 = vpop.f32.mrb[48].mxu0  ;;  %v1591_v60 = vpop.f32.mrb[48].mxu1 }
 0x574   :  { %v1548_v28 = vadd.f32 %v1542_v13, %v1507_v2  ;;  %v1597_v43 = vadd.f32 %v1591_v60, %v1556_v12  ;;  %v3171_v50 = vpop.f32.mrb[49].mxu0  ;;  %v3191_v51 = vpop.f32.mrb[49].mxu1 }
 0x575   :  { %v1545_v61 = vpop.f32.mrb[50].mxu0  ;;  %v1594_v46 = vpop.f32.mrb[50].mxu1 }
 0x576   :  { %v3172_v47 = vpop.f32.mrb[51].mxu0  ;;  %v3192_v54 = vpop.f32.mrb[51].mxu1  ;;  %v2499_v44 = vmul.f32 -1.442695, %v1548_v28  ;;  %v2500_v14 = vmul.f32 -1.442695, %v1597_v43 }
 0x578   :  { %3648 = vpow2.f32 %v2499_v44 }
 0x579   :  { %3650 = vpow2.f32 %v2500_v14 }
 0x582   :  { %v3649_v15 = vpop.eup %3648 }
 0x583   :  { %v3651_v63 = vpop.eup %3650  ;;  %v1552_v18 = vadd.f32 1.0, %v3649_v15 }
 0x584   :  { %v1601_v20 = vadd.f32 1.0, %v3651_v63 }
 0x585   :  { %3652 = vrcp.f32 %v1552_v18 }
 0x586   :  { %3654 = vrcp.f32 %v1601_v20 }
 0x58f   :  { %v3653_v50 = vpop.eup %3652 }
 0x590   :  { %v3655_v51 = vpop.eup %3654  ;;  %v1555_v46 = vmul.f32 %v3653_v50, %v4426_v22  ;;  %v4780_v22 = vld [vmem:[#allocation13_spill] sm:$0xff] }
 0x591   :  { %v1707_v18 = vrot.slane %v4780_v22, 4 }
 0x593   :  { %v1639_v53 = vpop.f32.mrb[52].mxu0  ;;  %v1687_v37 = vpop.f32.mrb[52].mxu1  ;;  %v1709_v20 = vunpack.c.l.bf16 %v1707_v18 }
 0x594   :  { %v1645_v38 = vadd.f32 %v1639_v53, %v1604_v23  ;;  %v1693_v9 = vadd.f32 %v1687_v37, %v1652_v57  ;;  %v3211_v10 = vpop.f32.mrb[53].mxu0  ;;  %v3231_v2 = vpop.f32.mrb[53].mxu1  ;;  %v1758_v23 = vunpack.c.l.bf16 %v4780_v22 }
 0x595   :  { %v1642_v12 = vpop.f32.mrb[54].mxu0  ;;  %v1690_v13 = vpop.f32.mrb[54].mxu1 }
 0x596   :  { %3656 = vtanh.f32 %v1645_v38  ;;  %v2501_v60 = vmul.f32 -1.442695, %v1693_v9  ;;  %v3212_v28 = vpop.f32.mrb[55].mxu0  ;;  %v3232_v43 = vpop.f32.mrb[55].mxu1 }
 0x598   :  { %3658 = vpow2.f32 %v2501_v60 }
 0x5a0   :  { %v3657_v61 = vpop.eup %3656 }
 0x5a1   :  { %v1647_v47 = vmul.f32 %v3657_v61, %v3655_v51  ;;  %v4781_v61 = vld [vmem:[#allocation14_spill] sm:$0xff] }
 0x5a2   :  { %v3659_v54 = vpop.eup %3658 }
 0x5a3   :  { %v4538_v44 = vadd.f32 %v1647_v47, %v1555_v46  ;;  %v1697_v14 = vadd.f32 1.0, %v3659_v54  ;;  %v1852_v46 = vrot.slane %v4781_v61, 4 }
 0x5a5   :  { %3660 = vtanh.f32 %v4538_v44 }
 0x5a6   :  { %3662 = vrcp.f32 %v1697_v14  ;;  %v1806_v14 = vunpack.c.l.bf16 %v4781_v61 }
 0x5af   :  { %v3661_v15 = vpop.eup %3660 }
 0x5b0   :  { %v3663_v63 = vpop.eup %3662 }
 0x5b1   :  { %v1701_v17 = vmul.f32 %v3663_v63, %v3661_v15  ;;  %v1854_v15 = vunpack.c.l.bf16 %v1852_v46 }
 0x5b3   :  { %v1702_v3 = vpack.c.bf16 %v1701_v17, %v1701_v17 }
 0x5b5   :  { %3250 = vmatmul.mubr.bf16.vlgmr.msra.gmra.mrb[56].mxu0 %v1702_v3  ;;  %3270 = vmatmul.mubr.bf16.vlgmr.msra.gmra.mrb[56].mxu1 %v1702_v3 }
 0x5b6   :  { %3274 = vmatpush3.bf16.msra.mxu0 %v4429_v39  ;;  %3294 = vmatpush3.bf16.msra.mxu1 %v4432_v40 }
 0x5b7   :  { %3275 = vmatprep.subr.bf16.mxu0 %v4777_v49  ;;  %3295 = vmatprep.subr.bf16.mxu1 %v4777_v49 }
 0x5b8   :  { %3289 = vmatprep.mubr.msk.bf16.mxu0 %vm3804_vm1, %v4777_v49  ;;  %3309 = vmatprep.mubr.msk.bf16.mxu1 %vm3804_vm1, %v4777_v49 }
 0x5ba   :  { %3276 = vmatpush3.bf16.msra.mxu0 %v4441_v19  ;;  %3296 = vmatpush3.bf16.msra.mxu1 %v4444_v41 }
 0x5bb   :  { %3277 = vmatprep.subr.bf16.mxu0 %v4777_v49  ;;  %3297 = vmatprep.subr.bf16.mxu1 %v4777_v49 }
 0x5be   :  { %3278 = vmatpush3.bf16.msra.mxu0 %v4449_v42  ;;  %3298 = vmatpush3.bf16.msra.mxu1 %v4452_v48 }
 0x5bf   :  { %3279 = vmatprep.subr.bf16.mxu0 %v4777_v49  ;;  %3299 = vmatprep.subr.bf16.mxu1 %v4777_v49 }
 0x5c2   :  { %3280 = vmatpush3.bf16.msra.mxu0 %v4457_v56  ;;  %3300 = vmatpush3.bf16.msra.mxu1 %v4460_v24 }
 0x5c3   :  { %3281 = vmatprep.subr.bf16.mxu0 %v4777_v49  ;;  %3301 = vmatprep.subr.bf16.mxu1 %v4777_v49 }
 0x5c6   :  { %3282 = vmatpush3.bf16.msra.mxu0 %v4465_v59  ;;  %3302 = vmatpush3.bf16.msra.mxu1 %v4468_v25 }
 0x5c7   :  { %3283 = vmatprep.subr.bf16.mxu0 %v4777_v49  ;;  %3303 = vmatprep.subr.bf16.mxu1 %v4777_v49 }
 0x5ca   :  { %3284 = vmatpush3.bf16.msra.mxu0 %v4473_v4  ;;  %3304 = vmatpush3.bf16.msra.mxu1 %v4476_v0 }
 0x5cb   :  { %3285 = vmatprep.subr.bf16.mxu0 %v4777_v49  ;;  %3305 = vmatprep.subr.bf16.mxu1 %v4777_v49 }
 0x5ce   :  { %3286 = vmatpush3.bf16.msra.mxu0 %v4481_v11  ;;  %3306 = vmatpush3.bf16.msra.mxu1 %v4484_v6 }
 0x5cf   :  { %3287 = vmatprep.subr.bf16.mxu0 %v4777_v49  ;;  %3307 = vmatprep.subr.bf16.mxu1 %v4777_v49 }
 0x5d2   :  { %3288 = vmatpush3.bf16.msra.mxu0 %v4489_v8  ;;  %3308 = vmatpush3.bf16.msra.mxu1 %v4492_v62 }
 0x5d3   :  { %3313 = vmatprep.subr.bf16.mxu0 %v4777_v49  ;;  %3333 = vmatprep.subr.bf16.mxu1 %v4777_v49 }
 0x5d5   :  { %3290 = vmatmul.mubr.bf16.vlgmr.msra.gmra.mrb[60].mxu0 %v1702_v3  ;;  %3310 = vmatmul.mubr.bf16.vlgmr.msra.gmra.mrb[60].mxu1 %v1702_v3 }
 0x5d6   :  { %3314 = vmatpush3.bf16.msra.mxu0 %v4273_v58  ;;  %3334 = vmatpush3.bf16.msra.mxu1 %v4276_v55 }
 0x5d7   :  { %3315 = vmatprep.subr.bf16.mxu0 %v4777_v49  ;;  %3335 = vmatprep.subr.bf16.mxu1 %v4777_v49 }
 0x5d8   :  { %3329 = vmatprep.mubr.msk.bf16.mxu0 %vm3804_vm1, %v4777_v49  ;;  %3349 = vmatprep.mubr.msk.bf16.mxu1 %vm3804_vm1, %v4777_v49 }
 0x5da   :  { %3316 = vmatpush3.bf16.msra.mxu0 %v4285_v45  ;;  %3336 = vmatpush3.bf16.msra.mxu1 %v4288_v52 }
 0x5db   :  { %3317 = vmatprep.subr.bf16.mxu0 %v4777_v49  ;;  %3337 = vmatprep.subr.bf16.mxu1 %v4777_v49 }
 0x5de   :  { %3318 = vmatpush3.bf16.msra.mxu0 %v4293_v21  ;;  %3338 = vmatpush3.bf16.msra.mxu1 %v4296_v5 }
 0x5df   :  { %3319 = vmatprep.subr.bf16.mxu0 %v4777_v49  ;;  %3339 = vmatprep.subr.bf16.mxu1 %v4777_v49 }
 0x5e2   :  { %3320 = vmatpush3.bf16.msra.mxu0 %v4381_v26  ;;  %3340 = vmatpush3.bf16.msra.mxu1 %v4384_v27 }
 0x5e3   :  { %3321 = vmatprep.subr.bf16.mxu0 %v4777_v49  ;;  %3341 = vmatprep.subr.bf16.mxu1 %v4777_v49 }
 0x5e6   :  { %3322 = vmatpush3.bf16.msra.mxu0 %v4389_v29  ;;  %3342 = vmatpush3.bf16.msra.mxu1 %v4392_v30 }
 0x5e7   :  { %3323 = vmatprep.subr.bf16.mxu0 %v4777_v49  ;;  %3343 = vmatprep.subr.bf16.mxu1 %v4777_v49 }
 0x5ea   :  { %3324 = vmatpush3.bf16.msra.mxu0 %v4397_v31  ;;  %3344 = vmatpush3.bf16.msra.mxu1 %v4400_v32 }
 0x5eb   :  { %3325 = vmatprep.subr.bf16.mxu0 %v4777_v49  ;;  %3345 = vmatprep.subr.bf16.mxu1 %v4777_v49 }
 0x5ee   :  { %3326 = vmatpush3.bf16.msra.mxu0 %v4405_v33  ;;  %3346 = vmatpush3.bf16.msra.mxu1 %v4408_v34 }
 0x5ef   :  { %3327 = vmatprep.subr.bf16.mxu0 %v4777_v49  ;;  %3347 = vmatprep.subr.bf16.mxu1 %v4777_v49 }
 0x5f2   :  { %3328 = vmatpush3.bf16.msra.mxu0 %v4413_v35  ;;  %3348 = vmatpush3.bf16.msra.mxu1 %v4416_v36 }
 0x5f3   :  { %3353 = vmatprep.subr.bf16.mxu0 %v4777_v49  ;;  %3373 = vmatprep.subr.bf16.mxu1 %v4777_v49 }
 0x688   :  { %v1744_v57 = vpop.f32.mrb[56].mxu0  ;;  %v1793_v53 = vpop.f32.mrb[56].mxu1 }
 0x689   :  { %v1750_v37 = vadd.f32 %v1744_v57, %v1709_v20  ;;  %v1799_v38 = vadd.f32 %v1793_v53, %v1758_v23  ;;  %v3251_v9 = vpop.f32.mrb[57].mxu0  ;;  %v3271_v10 = vpop.f32.mrb[57].mxu1 }
 0x68a   :  { %v1747_v2 = vpop.f32.mrb[58].mxu0  ;;  %v1796_v12 = vpop.f32.mrb[58].mxu1 }
 0x68b   :  { %v3252_v13 = vpop.f32.mrb[59].mxu0  ;;  %v3272_v60 = vpop.f32.mrb[59].mxu1  ;;  %v2502_v28 = vmul.f32 -1.442695, %v1750_v37  ;;  %v2503_v43 = vmul.f32 -1.442695, %v1799_v38 }
 0x68d   :  { %3664 = vpow2.f32 %v2502_v28 }
 0x68e   :  { %3666 = vpow2.f32 %v2503_v43 }
 0x697   :  { %v3665_v50 = vpop.eup %3664 }
 0x698   :  { %v3667_v51 = vpop.eup %3666  ;;  %v1754_v47 = vadd.f32 1.0, %v3665_v50 }
 0x699   :  { %v1803_v54 = vadd.f32 1.0, %v3667_v51 }
 0x69a   :  { %3668 = vrcp.f32 %v1754_v47  ;;  %v4782_v47 = vld [vmem:[#allocation15_spill] sm:$0xff] }
 0x69b   :  { %3670 = vrcp.f32 %v1803_v54  ;;  %v2054_v54 = vrot.slane %v4782_v47, 4 }
 0x6a4   :  { %v3669_v9 = vpop.eup %3668 }
 0x6a5   :  { %v3671_v10 = vpop.eup %3670  ;;  %v1757_v12 = vmul.f32 %v3669_v9, %v4538_v44 }
 0x6a8   :  { %v1841_v63 = vpop.f32.mrb[60].mxu0  ;;  %v1889_v17 = vpop.f32.mrb[60].mxu1 }
 0x6a9   :  { %v1847_v3 = vadd.f32 %v1841_v63, %v1806_v14  ;;  %v1895_v22 = vadd.f32 %v1889_v17, %v1854_v15  ;;  %v3291_v18 = vpop.f32.mrb[61].mxu0  ;;  %v3311_v20 = vpop.f32.mrb[61].mxu1  ;;  %v2008_v15 = vunpack.c.l.bf16 %v4782_v47  ;;  %v2056_v63 = vunpack.c.l.bf16 %v2054_v54 }
 0x6aa   :  { %v1844_v23 = vpop.f32.mrb[62].mxu0  ;;  %v1892_v57 = vpop.f32.mrb[62].mxu1 }
 0x6ab   :  { %3672 = vtanh.f32 %v1847_v3  ;;  %v2504_v53 = vmul.f32 -1.442695, %v1895_v22  ;;  %v3292_v37 = vpop.f32.mrb[63].mxu0  ;;  %v3312_v38 = vpop.f32.mrb[63].mxu1 }
 0x6ad   :  { %3674 = vpow2.f32 %v2504_v53 }
 0x6b5   :  { %v3673_v2 = vpop.eup %3672 }
 0x6b6   :  { %v1849_v13 = vmul.f32 %v3673_v2, %v3671_v10 }
 0x6b7   :  { %v3675_v60 = vpop.eup %3674 }
 0x6b8   :  { %v4618_v28 = vadd.f32 %v1849_v13, %v1757_v12  ;;  %v1899_v43 = vadd.f32 1.0, %v3675_v60 }
 0x6ba   :  { %3676 = vtanh.f32 %v4618_v28 }
 0x6bb   :  { %3678 = vrcp.f32 %v1899_v43 }
 0x6c4   :  { %v3677_v50 = vpop.eup %3676 }
 0x6c5   :  { %v3679_v51 = vpop.eup %3678 }
 0x6c6   :  { %v1903_v61 = vmul.f32 %v3679_v51, %v3677_v50 }
 0x6c8   :  { %v1904_v46 = vpack.c.bf16 %v1903_v61, %v1903_v61 }
 0x6ca   :  { %3330 = vmatmul.mubr.bf16.vlgmr.msra.gmra.mrb[64].mxu0 %v1904_v46  ;;  %3350 = vmatmul.mubr.bf16.vlgmr.msra.gmra.mrb[64].mxu1 %v1904_v46 }
 0x6cb   :  { %3354 = vmatpush3.bf16.msra.mxu0 %v4429_v39  ;;  %3374 = vmatpush3.bf16.msra.mxu1 %v4432_v40 }
 0x6cc   :  { %3355 = vmatprep.subr.bf16.mxu0 %v4777_v49  ;;  %3375 = vmatprep.subr.bf16.mxu1 %v4777_v49 }
 0x6cd   :  { %3369 = vmatprep.mubr.msk.bf16.mxu0 %vm3804_vm1, %v4777_v49  ;;  %3389 = vmatprep.mubr.msk.bf16.mxu1 %vm3804_vm1, %v4777_v49 }
 0x6cf   :  { %3356 = vmatpush3.bf16.msra.mxu0 %v4441_v19  ;;  %3376 = vmatpush3.bf16.msra.mxu1 %v4444_v41 }
 0x6d0   :  { %3357 = vmatprep.subr.bf16.mxu0 %v4777_v49  ;;  %3377 = vmatprep.subr.bf16.mxu1 %v4777_v49 }
 0x6d3   :  { %3358 = vmatpush3.bf16.msra.mxu0 %v4449_v42  ;;  %3378 = vmatpush3.bf16.msra.mxu1 %v4452_v48 }
 0x6d4   :  { %3359 = vmatprep.subr.bf16.mxu0 %v4777_v49  ;;  %3379 = vmatprep.subr.bf16.mxu1 %v4777_v49 }
 0x6d7   :  { %3360 = vmatpush3.bf16.msra.mxu0 %v4457_v56  ;;  %3380 = vmatpush3.bf16.msra.mxu1 %v4460_v24 }
 0x6d8   :  { %3361 = vmatprep.subr.bf16.mxu0 %v4777_v49  ;;  %3381 = vmatprep.subr.bf16.mxu1 %v4777_v49 }
 0x6db   :  { %3362 = vmatpush3.bf16.msra.mxu0 %v4465_v59  ;;  %3382 = vmatpush3.bf16.msra.mxu1 %v4468_v25 }
 0x6dc   :  { %3363 = vmatprep.subr.bf16.mxu0 %v4777_v49  ;;  %3383 = vmatprep.subr.bf16.mxu1 %v4777_v49 }
 0x6df   :  { %3364 = vmatpush3.bf16.msra.mxu0 %v4473_v4  ;;  %3384 = vmatpush3.bf16.msra.mxu1 %v4476_v0 }
 0x6e0   :  { %3365 = vmatprep.subr.bf16.mxu0 %v4777_v49  ;;  %3385 = vmatprep.subr.bf16.mxu1 %v4777_v49 }
 0x6e3   :  { %3366 = vmatpush3.bf16.msra.mxu0 %v4481_v11  ;;  %3386 = vmatpush3.bf16.msra.mxu1 %v4484_v6 }
 0x6e4   :  { %3367 = vmatprep.subr.bf16.mxu0 %v4777_v49  ;;  %3387 = vmatprep.subr.bf16.mxu1 %v4777_v49 }
 0x6e7   :  { %3368 = vmatpush3.bf16.msra.mxu0 %v4489_v8  ;;  %3388 = vmatpush3.bf16.msra.mxu1 %v4492_v62 }
 0x6e8   :  { %3393 = vmatprep.subr.bf16.mxu0 %v4777_v49  ;;  %3413 = vmatprep.subr.bf16.mxu1 %v4777_v49 }
 0x6ea   :  { %3370 = vmatmul.mubr.bf16.vlgmr.msra.gmra.mrb[68].mxu0 %v1904_v46  ;;  %3390 = vmatmul.mubr.bf16.vlgmr.msra.gmra.mrb[68].mxu1 %v1904_v46 }
 0x6eb   :  { %3394 = vmatpush3.bf16.msra.mxu0 %v4273_v58  ;;  %3414 = vmatpush3.bf16.msra.mxu1 %v4276_v55  ;;  %v1909_v58 = vrot.slane %v4141_v1, 4 }
 0x6ec   :  { %3395 = vmatprep.subr.bf16.mxu0 %v4777_v49  ;;  %3415 = vmatprep.subr.bf16.mxu1 %v4777_v49 }
 0x6ed   :  { %3409 = vmatprep.mubr.msk.bf16.mxu0 %vm3804_vm1, %v4777_v49  ;;  %3429 = vmatprep.mubr.msk.bf16.mxu1 %vm3804_vm1, %v4777_v49  ;;  %v1911_v55 = vunpack.c.l.bf16 %v1909_v58 }
 0x6ef   :  { %3396 = vmatpush3.bf16.msra.mxu0 %v4285_v45  ;;  %3416 = vmatpush3.bf16.msra.mxu1 %v4288_v52  ;;  %v1960_v45 = vunpack.c.l.bf16 %v4141_v1 }
 0x6f0   :  { %3397 = vmatprep.subr.bf16.mxu0 %v4777_v49  ;;  %3417 = vmatprep.subr.bf16.mxu1 %v4777_v49 }
 0x6f3   :  { %3398 = vmatpush3.bf16.msra.mxu0 %v4293_v21  ;;  %3418 = vmatpush3.bf16.msra.mxu1 %v4296_v5 }
 0x6f4   :  { %3399 = vmatprep.subr.bf16.mxu0 %v4777_v49  ;;  %3419 = vmatprep.subr.bf16.mxu1 %v4777_v49 }
 0x6f7   :  { %3400 = vmatpush3.bf16.msra.mxu0 %v4381_v26  ;;  %3420 = vmatpush3.bf16.msra.mxu1 %v4384_v27 }
 0x6f8   :  { %3401 = vmatprep.subr.bf16.mxu0 %v4777_v49  ;;  %3421 = vmatprep.subr.bf16.mxu1 %v4777_v49 }
 0x6fb   :  { %3402 = vmatpush3.bf16.msra.mxu0 %v4389_v29  ;;  %3422 = vmatpush3.bf16.msra.mxu1 %v4392_v30 }
 0x6fc   :  { %3403 = vmatprep.subr.bf16.mxu0 %v4777_v49  ;;  %3423 = vmatprep.subr.bf16.mxu1 %v4777_v49 }
 0x6ff   :  { %3404 = vmatpush3.bf16.msra.mxu0 %v4397_v31  ;;  %3424 = vmatpush3.bf16.msra.mxu1 %v4400_v32 }
 0x700   :  { %3405 = vmatprep.subr.bf16.mxu0 %v4777_v49  ;;  %3425 = vmatprep.subr.bf16.mxu1 %v4777_v49 }
 0x703   :  { %3406 = vmatpush3.bf16.msra.mxu0 %v4405_v33  ;;  %3426 = vmatpush3.bf16.msra.mxu1 %v4408_v34 }
 0x704   :  { %3407 = vmatprep.subr.bf16.mxu0 %v4777_v49  ;;  %3427 = vmatprep.subr.bf16.mxu1 %v4777_v49 }
 0x707   :  { %3408 = vmatpush3.bf16.msra.mxu0 %v4413_v35  ;;  %3428 = vmatpush3.bf16.msra.mxu1 %v4416_v36 }
 0x708   :  { %3433 = vmatprep.subr.bf16.mxu0 %v4777_v49  ;;  %3453 = vmatprep.subr.bf16.mxu1 %v4777_v49 }
 0x79d   :  { %v1946_v52 = vpop.f32.mrb[64].mxu0  ;;  %v1995_v21 = vpop.f32.mrb[64].mxu1 }
 0x79e   :  { %v1952_v5 = vadd.f32 %v1946_v52, %v1911_v55  ;;  %v2001_v26 = vadd.f32 %v1995_v21, %v1960_v45  ;;  %v3331_v27 = vpop.f32.mrb[65].mxu0  ;;  %v3351_v29 = vpop.f32.mrb[65].mxu1  ;;  %v2325_v52 = vld [vmem:[#allocation7 + $0x60] sm:$0xff]  ;;  %v2326_v21 = vld [vmem:[#allocation7 + $0x68] sm:$0xff] }
 0x79f   :  { %v1949_v30 = vpop.f32.mrb[66].mxu0  ;;  %v1998_v31 = vpop.f32.mrb[66].mxu1  ;;  %v2328_v27 = vld [vmem:[#allocation7 + $0x78] sm:$0xff] }
 0x7a0   :  { %v3332_v32 = vpop.f32.mrb[67].mxu0  ;;  %v3352_v33 = vpop.f32.mrb[67].mxu1  ;;  %v2505_v34 = vmul.f32 -1.442695, %v1952_v5  ;;  %v2506_v35 = vmul.f32 -1.442695, %v2001_v26  ;;  %v3527_v5 = vpack.c.bf16 %v2326_v21, %v2325_v52 }
 0x7a1   :  { %v2327_v26 = vld [vmem:[#allocation7 + $0x70] sm:$0xff]  ;;  %v2111_v30 = vrot.slane %v4147_v16, 4  ;;  %v2162_v32 = vunpack.c.l.bf16 %v4147_v16 }
 0x7a2   :  { %3680 = vpow2.f32 %v2505_v34  ;;  %v3530_v29 = vpack.c.bf16 %v2328_v27, %v2327_v26 }
 0x7a3   :  { %3682 = vpow2.f32 %v2506_v35  ;;  %v2113_v31 = vunpack.c.l.bf16 %v2111_v30 }
 0x7ac   :  { %v3681_v36 = vpop.eup %3680 }
 0x7ad   :  { %v3683_v44 = vpop.eup %3682  ;;  %v1956_v14 = vadd.f32 1.0, %v3681_v36 }
 0x7ae   :  { %v2005_v1 = vadd.f32 1.0, %v3683_v44 }
 0x7af   :  { %3684 = vrcp.f32 %v1956_v14 }
 0x7b0   :  { %3686 = vrcp.f32 %v2005_v1 }
 0x7b9   :  { %v3685_v10 = vpop.eup %3684 }
 0x7ba   :  { %v3687_v2 = vpop.eup %3686  ;;  %v1959_v13 = vmul.f32 %v3685_v10, %v4618_v28  ;;  %v2324_v28 = vld [vmem:[#allocation7 + $0x58] sm:$0xff] }
 0x7bd   :  { %v2043_v17 = vpop.f32.mrb[68].mxu0  ;;  %v2091_v3 = vpop.f32.mrb[68].mxu1 }
 0x7be   :  { %v2049_v22 = vadd.f32 %v2043_v17, %v2008_v15  ;;  %v2097_v18 = vadd.f32 %v2091_v3, %v2056_v63  ;;  %v3371_v20 = vpop.f32.mrb[69].mxu0  ;;  %v3391_v23 = vpop.f32.mrb[69].mxu1 }
 0x7bf   :  { %v2046_v57 = vpop.f32.mrb[70].mxu0  ;;  %v2094_v53 = vpop.f32.mrb[70].mxu1  ;;  %v2210_v23 = vunpack.c.l.bf16 %v4149_v7 }
 0x7c0   :  { %3688 = vtanh.f32 %v2049_v22  ;;  %v2507_v37 = vmul.f32 -1.442695, %v2097_v18  ;;  %v3372_v38 = vpop.f32.mrb[71].mxu0  ;;  %v3392_v9 = vpop.f32.mrb[71].mxu1  ;;  %v2256_v18 = vrot.slane %v4149_v7, 4 }
 0x7c2   :  { %3690 = vpow2.f32 %v2507_v37  ;;  %v2258_v57 = vunpack.c.l.bf16 %v2256_v18 }
 0x7ca   :  { %v3689_v12 = vpop.eup %3688 }
 0x7cb   :  { %v2051_v60 = vmul.f32 %v3689_v12, %v3687_v2 }
 0x7cc   :  { %v3691_v43 = vpop.eup %3690 }
 0x7cd   :  { %v4698_v50 = vadd.f32 %v2051_v60, %v1959_v13  ;;  %v2101_v51 = vadd.f32 1.0, %v3691_v43 }
 0x7cf   :  { %3692 = vtanh.f32 %v4698_v50 }
 0x7d0   :  { %3694 = vrcp.f32 %v2101_v51 }
 0x7d9   :  { %v3693_v61 = vpop.eup %3692 }
 0x7da   :  { %v3695_v46 = vpop.eup %3694 }
 0x7db   :  { %v2105_v58 = vmul.f32 %v3695_v46, %v3693_v61 }
 0x7dd   :  { %v2106_v55 = vpack.c.bf16 %v2105_v58, %v2105_v58 }
 0x7df   :  { %3410 = vmatmul.mubr.bf16.vlgmr.msra.gmra.mrb[72].mxu0 %v2106_v55  ;;  %3430 = vmatmul.mubr.bf16.vlgmr.msra.gmra.mrb[72].mxu1 %v2106_v55 }
 0x7e0   :  { %3434 = vmatpush3.bf16.msra.mxu0 %v4429_v39  ;;  %3454 = vmatpush3.bf16.msra.mxu1 %v4432_v40  ;;  %v4783_v39 = vmov 0.0|0.0   ;;  %v2313_v40 = vld [vmem:[#allocation7] sm:$0xff] }
 0x7e1   :  { %3435 = vmatprep.subr.bf16.mxu0 %v4777_v49  ;;  %3455 = vmatprep.subr.bf16.mxu1 %v4777_v49 }
 0x7e2   :  { %3449 = vmatprep.mubr.msk.bf16.mxu0 %vm3804_vm1, %v4777_v49  ;;  %3469 = vmatprep.mubr.msk.bf16.mxu1 %vm3804_vm1, %v4777_v49 }
 0x7e4   :  { %3436 = vmatpush3.bf16.msra.mxu0 %v4441_v19  ;;  %3456 = vmatpush3.bf16.msra.mxu1 %v4444_v41  ;;  %v2314_v19 = vld [vmem:[#allocation7 + $0x8] sm:$0xff] }
 0x7e5   :  { %3437 = vmatprep.subr.bf16.mxu0 %v4777_v49  ;;  %3457 = vmatprep.subr.bf16.mxu1 %v4777_v49  ;;  %v3509_v41 = vpack.c.bf16 %v2314_v19, %v2313_v40 }
 0x7e8   :  { %3438 = vmatpush3.bf16.msra.mxu0 %v4449_v42  ;;  %3458 = vmatpush3.bf16.msra.mxu1 %v4452_v48  ;;  %v2315_v42 = vld [vmem:[#allocation7 + $0x10] sm:$0xff]  ;;  %v2316_v48 = vld [vmem:[#allocation7 + $0x18] sm:$0xff] }
 0x7e9   :  { %3439 = vmatprep.subr.bf16.mxu0 %v4777_v49  ;;  %3459 = vmatprep.subr.bf16.mxu1 %v4777_v49 }
 0x7ec   :  { %3440 = vmatpush3.bf16.msra.mxu0 %v4457_v56  ;;  %3460 = vmatpush3.bf16.msra.mxu1 %v4460_v24  ;;  %v3512_v56 = vpack.c.bf16 %v2316_v48, %v2315_v42  ;;  %v2317_v24 = vld [vmem:[#allocation7 + $0x20] sm:$0xff] }
 0x7ed   :  { %3441 = vmatprep.subr.bf16.mxu0 %v4777_v49  ;;  %3461 = vmatprep.subr.bf16.mxu1 %v4777_v49 }
 0x7f0   :  { %3442 = vmatpush3.bf16.msra.mxu0 %v4465_v59  ;;  %3462 = vmatpush3.bf16.msra.mxu1 %v4468_v25  ;;  %v2318_v59 = vld [vmem:[#allocation7 + $0x28] sm:$0xff] }
 0x7f1   :  { %3443 = vmatprep.subr.bf16.mxu0 %v4777_v49  ;;  %3463 = vmatprep.subr.bf16.mxu1 %v4777_v49  ;;  %v3515_v25 = vpack.c.bf16 %v2318_v59, %v2317_v24 }
 0x7f4   :  { %3444 = vmatpush3.bf16.msra.mxu0 %v4473_v4  ;;  %3464 = vmatpush3.bf16.msra.mxu1 %v4476_v0  ;;  %v2319_v4 = vld [vmem:[#allocation7 + $0x30] sm:$0xff] }
 0x7f5   :  { %3445 = vmatprep.subr.bf16.mxu0 %v4777_v49  ;;  %3465 = vmatprep.subr.bf16.mxu1 %v4777_v49 }
 0x7f8   :  { %3446 = vmatpush3.bf16.msra.mxu0 %v4481_v11  ;;  %3466 = vmatpush3.bf16.msra.mxu1 %v4484_v6  ;;  %v2321_v11 = vld [vmem:[#allocation7 + $0x40] sm:$0xff]  ;;  %v2322_v6 = vld [vmem:[#allocation7 + $0x48] sm:$0xff] }
 0x7f9   :  { %3447 = vmatprep.subr.bf16.mxu0 %v4777_v49  ;;  %3467 = vmatprep.subr.bf16.mxu1 %v4777_v49 }
 0x7fc   :  { %3448 = vmatpush3.bf16.msra.mxu0 %v4489_v8  ;;  %3468 = vmatpush3.bf16.msra.mxu1 %v4492_v62  ;;  %v3521_v8 = vpack.c.bf16 %v2322_v6, %v2321_v11  ;;  %v2323_v62 = vld [vmem:[#allocation7 + $0x50] sm:$0xff] }
 0x7fd   :  { %3508 = vmatprep.subr.bf16.mxu0 %v4783_v39  ;;  %v3524_v45 = vpack.c.bf16 %v2324_v28, %v2323_v62 }
 0x7ff   :  { %3450 = vmatmul.mubr.bf16.vlgmr.msra.gmra.mrb[76].mxu0 %v2106_v55  ;;  %3470 = vmatmul.mubr.bf16.vlgmr.msra.gmra.mrb[76].mxu1 %v2106_v55 }
 0x800   :  { %3505 = vmatprep.mubr.msk.f32.mxu0 %vm3804_vm1, %v4777_v49  ;;  %3510 = vmatpush3.bf16.msra.mxu0 %v3509_v41  ;;  %v2320_v49 = vld [vmem:[#allocation7 + $0x38] sm:$0xff] }
 0x801   :  { %3511 = vmatprep.subr.bf16.mxu0 %v4783_v39  ;;  %v3518_v0 = vpack.c.bf16 %v2320_v49, %v2319_v4 }
 0x804   :  { %3513 = vmatpush3.bf16.msra.mxu0 %v3512_v56  ;;  %v2511_v56 = vld [vmem:[%s4761_s5] ss:$0 sm:$0xff] }
 0x805   :  { %3514 = vmatprep.subr.bf16.mxu0 %v4783_v39 }
 0x808   :  { %3516 = vmatpush3.bf16.msra.mxu0 %v3515_v25 }
 0x809   :  { %3517 = vmatprep.subr.bf16.mxu0 %v4783_v39 }
 0x80c   :  { %3519 = vmatpush3.bf16.msra.mxu0 %v3518_v0 }
 0x80d   :  { %3520 = vmatprep.subr.bf16.mxu0 %v4783_v39 }
 0x810   :  { %3522 = vmatpush3.bf16.msra.mxu0 %v3521_v8 }
 0x811   :  { %3523 = vmatprep.subr.bf16.mxu0 %v4783_v39 }
 0x814   :  { %3525 = vmatpush3.bf16.msra.mxu0 %v3524_v45 }
 0x815   :  { %3526 = vmatprep.subr.bf16.mxu0 %v4783_v39 }
 0x818   :  { %3528 = vmatpush3.bf16.msra.mxu0 %v3527_v5 }
 0x819   :  { %3529 = vmatprep.subr.bf16.mxu0 %v4783_v39 }
 0x81c   :  { %3531 = vmatpush3.bf16.msra.mxu0 %v3530_v29 }
 0x8b2   :  { %v2148_v33 = vpop.f32.mrb[72].mxu0  ;;  %v2197_v34 = vpop.f32.mrb[72].mxu1 }
 0x8b3   :  { %v2154_v35 = vadd.f32 %v2148_v33, %v2113_v31  ;;  %v2203_v36 = vadd.f32 %v2197_v34, %v2162_v32  ;;  %v3411_v44 = vpop.f32.mrb[73].mxu0  ;;  %v3431_v47 = vpop.f32.mrb[73].mxu1 }
 0x8b4   :  { %v2151_v54 = vpop.f32.mrb[74].mxu0  ;;  %v2200_v14 = vpop.f32.mrb[74].mxu1 }
 0x8b5   :  { %v3412_v1 = vpop.f32.mrb[75].mxu0  ;;  %v3432_v15 = vpop.f32.mrb[75].mxu1  ;;  %v2508_v63 = vmul.f32 -1.442695, %v2154_v35  ;;  %v2509_v17 = vmul.f32 -1.442695, %v2203_v36 }
 0x8b7   :  { %3696 = vpow2.f32 %v2508_v63 }
 0x8b8   :  { %3698 = vpow2.f32 %v2509_v17 }
 0x8c1   :  { %v3697_v3 = vpop.eup %3696 }
 0x8c2   :  { %v3699_v22 = vpop.eup %3698  ;;  %v2158_v20 = vadd.f32 1.0, %v3697_v3 }
 0x8c3   :  { %v2207_v16 = vadd.f32 1.0, %v3699_v22 }
 0x8c4   :  { %3700 = vrcp.f32 %v2158_v20 }
 0x8c5   :  { %3702 = vrcp.f32 %v2207_v16 }
 0x8ce   :  { %v3701_v61 = vpop.eup %3700 }
 0x8cf   :  { %v3703_v46 = vpop.eup %3702  ;;  %v2161_v7 = vmul.f32 %v3701_v61, %v4698_v50 }
 0x8d2   :  { %v2245_v53 = vpop.f32.mrb[76].mxu0  ;;  %v2293_v37 = vpop.f32.mrb[76].mxu1 }
 0x8d3   :  { %v2251_v38 = vadd.f32 %v2245_v53, %v2210_v23  ;;  %v2299_v9 = vadd.f32 %v2293_v37, %v2258_v57  ;;  %v3451_v10 = vpop.f32.mrb[77].mxu0  ;;  %v3471_v2 = vpop.f32.mrb[77].mxu1 }
 0x8d4   :  { %v2248_v12 = vpop.f32.mrb[78].mxu0  ;;  %v2296_v13 = vpop.f32.mrb[78].mxu1 }
 0x8d5   :  { %3704 = vtanh.f32 %v2251_v38  ;;  %v2510_v60 = vmul.f32 -1.442695, %v2299_v9  ;;  %v3452_v43 = vpop.f32.mrb[79].mxu0  ;;  %v3472_v51 = vpop.f32.mrb[79].mxu1 }
 0x8d7   :  { %3706 = vpow2.f32 %v2510_v60 }
 0x8df   :  { %v3705_v58 = vpop.eup %3704 }
 0x8e0   :  { %v2253_v55 = vmul.f32 %v3705_v58, %v3703_v46 }
 0x8e1   :  { %v3707_v39 = vpop.eup %3706 }
 0x8e2   :  { %v2254_v40 = vadd.f32 %v2253_v55, %v2161_v7  ;;  %v2303_v19 = vadd.f32 1.0, %v3707_v39 }
 0x8e4   :  { %3708 = vtanh.f32 %v2254_v40 }
 0x8e5   :  { %3710 = vrcp.f32 %v2303_v19 }
 0x8ee   :  { %v3709_v41 = vpop.eup %3708 }
 0x8ef   :  { %v3711_v42 = vpop.eup %3710 }
 0x8f0   :  { %v2307_v48 = vmul.f32 %v3711_v42, %v3709_v41 }
 0x8f2   :  { %3506 = vmatmul.mubr.f32.vlgmr.msra.gmra.mrb[80].mxu0 %v2307_v48 }
 0x9c5   :  { %v2402_v24 = vpop.f32.mrb[80].mxu0 }
 0x9c6   :  { %v2403_v59 = vadd.f32 %v2511_v56, %v2402_v24  ;;  %v3507_v25 = vpop.f32.mrb[81].mxu0 }
 0x9c8   :  { %2406 = vmax.xlane.f32.xlu0 %v2403_v59 }
 0xa55   :  { %v2407_v4 = vpop.xlane.xlu0 %2406 }
 0xa56   :  { %v2408_v50 = vsub.f32 %v2403_v59, %v2407_v4 }
 0xa58   :  { %v2409_v49 = vmul.f32 1.442695, %v2408_v50 }
 0xa5a   :  { %3712 = vpow2.f32 %v2409_v49 }
 0xa64   :  { %v3713_v0 = vpop.eup %3712 }
 0xa65   :  { %2411 = vadd.xlane.f32.xlu0 %v3713_v0 }
 0xaf2   :  { %v2412_v11 = vpop.xlane.xlu0 %2411 }
 0xaf3   :  { %3714 = vlog2.f32 %v2412_v11 }
 0xafd   :  { %v3715_v6 = vpop.eup %3714 }
 0xafe   :  { %v2414_v8 = vmul.f32 0.6931472, %v3715_v6 }
 0xb00   :  { %v2415_v62 = vsub.f32 %v2408_v50, %v2414_v8 }
 0xb02   :  { %2416 = vst [vmem:[%s4762_s6] sm:$0xff] %v2415_v62 }
 0xb03   :  { %2421 = vsyncpa [#allocation6], 1 }
 0xb04   :  { %2422 = vsyncpa [#allocation8], 1 }

</bundles_post_ra>
